<compile_context>
chip_gen: v5e
topology: v5e:2x2
jax: 0.10.0
libtpu: 0.0.40
codegen_flags: <defaults>
</compile_context>

<pallas_src>
import math

import numpy as np
import jax
import jax.numpy as jnp
from jax import lax
from jax.experimental import pallas as pl
from jax.experimental.pallas import tpu as pltpu


# --------------------------------------------------------------------------
# Host-built constant matrices
# --------------------------------------------------------------------------

def _adaptive_pool_matrix(n_in, n_out=7):
    """PyTorch AdaptiveAvgPool bins as a (n_out, n_in) averaging matrix (numpy)."""
    P = np.zeros((n_out, n_in), np.float32)
    for i in range(n_out):
        s = (i * n_in) // n_out
        e = math.ceil((i + 1) * n_in / n_out)
        P[i, s:e] = 1.0 / (e - s)
    return P


def _block_diag(mat, reps):
    """Block-diagonal tiling of `mat` `reps` times (numpy)."""
    r, c = mat.shape
    out = np.zeros((reps * r, reps * c), np.float32)
    for i in range(reps):
        out[i * r:(i + 1) * r, i * c:(i + 1) * c] = mat
    return out


def _even_odd_cols(L):
    """(L, L//2) selectors picking even / odd lanes (column maxpool via MXU)."""
    rows = np.arange(L)[:, None]
    cols = np.arange(L // 2)[None, :]
    e = (rows == 2 * cols).astype(np.float32)
    o = (rows == 2 * cols + 1).astype(np.float32)
    return jnp.asarray(e), jnp.asarray(o)


def _even_odd_rows(H):
    """(H//2, H) selectors picking even / odd rows (row maxpool via MXU)."""
    rows = np.arange(H // 2)[:, None]
    cols = np.arange(H)[None, :]
    e = (cols == 2 * rows).astype(np.float32)
    o = (cols == 2 * rows + 1).astype(np.float32)
    return jnp.asarray(e), jnp.asarray(o)


def _band_matrices(w_l, w_img, lp):
    """Fold the W-direction conv taps (and packed-image zero padding) into banded
    (L, L) coefficient matrices.

    Returns B of shape (cin, 3, L, L) with L = lp * w_img such that
        (xc @ B[ci, ky])[y, m] = sum_kx w[0, ci, ky, kx] * xc[y, m + kx - 1]
    where taps that would cross a packed-image boundary are zero (conv padding=1).
    """
    cin = w_l.shape[1]
    L = lp * w_img
    idx = np.arange(L)
    same_img = (idx[:, None] // w_img) == (idx[None, :] // w_img)
    masks = []
    for kx in range(3):
        band = (idx[:, None] - idx[None, :]) == (kx - 1)          # l - m == kx - 1
        masks.append(jnp.asarray((band & same_img).astype(np.float32)))
    w = w_l[0].astype(jnp.float32)                                # (cin, 3, 3)
    B = sum(w[:, :, kx][:, :, None, None] * masks[kx][None, None] for kx in range(3))
    return B                                                      # (cin, 3, L, L)


# --------------------------------------------------------------------------
# Fused features + adaptive-avgpool kernel
# --------------------------------------------------------------------------

def _build_kernel(plan):
    """plan: tuple of "conv" / "pool" mirroring cfg; adaptive pool is implicit at the end."""
    f32 = jnp.float32

    def shift_rows(t, d):
        # result[y, :] = t[y + d, :], zero-filled outside (conv padding=1 along H).
        if d == 0:
            return t
        z = jnp.zeros((1, t.shape[1]), f32)
        if d > 0:
            return jnp.concatenate([t[1:, :], z], axis=0)
        return jnp.concatenate([z, t[:-1, :]], axis=0)

    def kernel(bias_ref, x_ref, *rest):
        const_refs = rest[:-1]
        out_ref = rest[-1]
        nbg, cin0 = x_ref.shape[0], x_ref.shape[1]

        # Unrolled loop over the packed groups in this block: each group is processed
        # with 2-D (H, L) values -> tiny live set, everything heavy on the MXU.
        for b in range(nbg):
            chans = [x_ref[b, c].astype(f32) for c in range(cin0)]
            ptr = 0
            bidx = 0
            for op in plan:
                if op == "conv":
                    band_ref = const_refs[ptr]          # (cin, 3, L, L)
                    ptr += 1
                    cin = band_ref.shape[0]
                    acc = None
                    for ci in range(cin):
                        xc = chans[ci]
                        for ky in range(3):
                            r = jnp.dot(xc, band_ref[ci, ky],
                                        preferred_element_type=f32)      # MXU
                            r = shift_rows(r, ky - 1)
                            acc = r if acc is None else acc + r
                    chans = [jnp.maximum(acc + bias_ref[bidx], 0.0)]      # bias + ReLU
                    bidx += 1
                else:  # "pool": MaxPool2d(2, 2) via even/odd selection matmuls
                    swe = const_refs[ptr][...]
                    swo = const_refs[ptr + 1][...]
                    she = const_refs[ptr + 2][...]
                    sho = const_refs[ptr + 3][...]
                    ptr += 4
                    new = []
                    for t in chans:
                        zw = jnp.maximum(
                            jnp.dot(t, swe, preferred_element_type=f32),
                            jnp.dot(t, swo, preferred_element_type=f32))
                        new.append(jnp.maximum(
                            jnp.dot(she, zw, preferred_element_type=f32),
                            jnp.dot(sho, zw, preferred_element_type=f32)))
                    chans = new

            # AdaptiveAvgPool2d((7, 7)): separable averaging matmuls (block-diag along W
            # so the per-image binning respects the lane packing).
            ph = const_refs[ptr][...]                   # (7, Hf)
            pwt = const_refs[ptr + 1][...]              # (LP*Wf, LP*7)
            p = jnp.dot(ph, chans[0], preferred_element_type=f32)
            out_ref[b] = jnp.dot(p, pwt, preferred_element_type=f32)

    return kernel


# --------------------------------------------------------------------------
# Wrapper
# --------------------------------------------------------------------------

def narrow_vgg_forward_pallas(x, params, cfg, block_groups=4, return_pooled=False):
    """narrow_VGG forward.  Returns classifier output (N, 1); optionally the pooled 7x7."""
    N, C, H, W = x.shape

    # Lane-pack LP images per 128-lane vreg row.
    LP = max(1, 128 // W)

    # Spatial plan / sanity checks.
    Hc, Wc = H, W
    for v in cfg:
        if v == 'M':
            assert Hc % 2 == 0 and Wc % 2 == 0, "maxpool needs even spatial dims"
            Hc //= 2
            Wc //= 2
        else:
            assert v == 1, "narrow VGG kernel assumes every conv has out_channels == 1"
    Hf, Wf = Hc, Wc
    assert Hf >= 7 and Wf >= 7, "AdaptiveAvgPool2d((7,7)) needs >=7x7 feature map"

    # ---- pack LP images along lanes (keep native input dtype; cast in-kernel) ----
    Np = -(-N // LP) * LP
    if Np != N:
        x = jnp.concatenate([x, jnp.zeros((Np - N, C, H, W), x.dtype)], axis=0)
    G = Np // LP
    xg = x.reshape(G, LP, C, H, W).transpose(0, 2, 3, 1, 4).reshape(G, C, H, LP * W)

    # Groups per grid step: amortize the per-step overhead, but keep >=2 steps when
    # possible so v7x megacore can shard the batch axis.
    NBG = max(1, min(block_groups, G))
    if G >= 2:
        NBG = min(NBG, -(-G // 2))
    Gpad = -(-G // NBG) * NBG
    if Gpad != G:
        xg = jnp.concatenate(
            [xg, jnp.zeros((Gpad - G,) + xg.shape[1:], xg.dtype)], axis=0)

    # ---- host-built constants (fetched once: constant index maps) ----
    consts = []
    plan = []
    biases = []
    conv_idx = 0
    Hc, Wc = H, W
    for v in cfg:
        if v == 'M':
            swe, swo = _even_odd_cols(LP * Wc)
            she, sho = _even_odd_rows(Hc)
            consts += [swe, swo, she, sho]
            plan.append("pool")
            Hc //= 2
            Wc //= 2
        else:
            w_l = params["conv_w"][conv_idx]                      # (1, cin, 3, 3)
            consts.append(_band_matrices(w_l, Wc, LP))            # (cin, 3, L, L)
            biases.append(params["conv_b"][conv_idx].reshape(()))
            plan.append("conv")
            conv_idx += 1
    ph = jnp.asarray(_adaptive_pool_matrix(Hf, 7))                            # (7, Hf)
    pwt = jnp.asarray(_block_diag(_adaptive_pool_matrix(Wf, 7).T, LP))        # (LP*Wf, LP*7)
    consts += [ph, pwt]
    bias_arr = jnp.stack(biases).astype(jnp.float32)              # (n_convs,) in SMEM

    def _const_spec(shape):
        nd = len(shape)
        return pl.BlockSpec(shape, lambda b, _nd=nd: (0,) * _nd)

    in_specs = [
        pl.BlockSpec(memory_space=pltpu.MemorySpace.SMEM),                    # conv biases
        pl.BlockSpec((NBG, C, H, LP * W), lambda b: (b, 0, 0, 0)),            # packed images
    ]
    in_specs += [_const_spec(cst.shape) for cst in consts]

    pooled_packed = pl.pallas_call(
        _build_kernel(tuple(plan)),
        out_shape=jax.ShapeDtypeStruct((Gpad, 7, LP * 7), jnp.float32),
        grid=(Gpad // NBG,),
        in_specs=in_specs,
        out_specs=pl.BlockSpec((NBG, 7, LP * 7), lambda b: (b, 0, 0)),
        compiler_params=pltpu.CompilerParams(
            dimension_semantics=("parallel",)),                   # megacore on v7x
    )(bias_arr, xg, *consts)

    # Un-pack the lane-packed pooled features: (Gpad, 7, LP*7) -> (N, 7, 7).
    pooled = (pooled_packed.reshape(Gpad, 7, LP, 7)
              .transpose(0, 2, 1, 3)
              .reshape(Gpad * LP, 7, 7)[:N])

    # Tiny classifier (Linear(49,1)+ReLU, Linear(1,1)+ReLU) in the wrapper (per review).
    flat = pooled.reshape(N, 49)
    y = jnp.maximum(flat @ params["W1"].T + params["b1"], 0.0)
    y = jnp.maximum(y @ params["W2"].T + params["b2"], 0.0)
    if return_pooled:
        return y, pooled
    return y


# --------------------------------------------------------------------------
# Parameter construction (mirrors narrow_VGG._initialize_weights)
# --------------------------------------------------------------------------

def make_narrow_vgg_params(key, cfg, in_channels=3):
    params = {"conv_w": [], "conv_b": []}
    c_in = in_channels
    for v in cfg:
        if v == 'M':
            continue
        key, k = jax.random.split(key)
        fan_out = v * 3 * 3                                       # kaiming_normal_, fan_out
        w = math.sqrt(2.0 / fan_out) * jax.random.normal(k, (v, c_in, 3, 3), jnp.float32)
        params["conv_w"].append(w)
        params["conv_b"].append(jnp.zeros((v,), jnp.float32))
        c_in = v
    key, k1, k2 = jax.random.split(key, 3)
    params["W1"] = 0.01 * jax.random.normal(k1, (1, 49), jnp.float32)   # Linear(49, 1)
    params["b1"] = jnp.zeros((1,), jnp.float32)
    params["W2"] = 0.01 * jax.random.normal(k2, (1, 1), jnp.float32)    # Linear(1, 1)
    params["b2"] = jnp.zeros((1,), jnp.float32)
    return params


# --------------------------------------------------------------------------
# Pure-JAX reference (PyTorch semantics) for validation
# --------------------------------------------------------------------------

def narrow_vgg_reference(x, params, cfg):
    h = x.astype(jnp.float32)
    ci = 0
    for v in cfg:
        if v == 'M':
            h = lax.reduce_window(h, -jnp.inf, lax.max,
                                  (1, 1, 2, 2), (1, 1, 2, 2), 'VALID')
        else:
            Wt = params["conv_w"][ci]
            bt = params["conv_b"][ci]
            ci += 1
            h = lax.conv_general_dilated(
                h, Wt, (1, 1), ((1, 1), (1, 1)),
                dimension_numbers=('NCHW', 'OIHW', 'NCHW'),
                precision=lax.Precision.HIGHEST)
            h = jnp.maximum(h + bt.reshape(1, -1, 1, 1), 0.0)
    N, C, Hf, Wf = h.shape
    rows = []
    for i in range(7):
        hs, he = (i * Hf) // 7, math.ceil((i + 1) * Hf / 7)
        cols = []
        for j in range(7):
            ws, we = (j * Wf) // 7, math.ceil((j + 1) * Wf / 7)
            cols.append(jnp.mean(h[:, :, hs:he, ws:we], axis=(2, 3)))
        rows.append(jnp.stack(cols, axis=-1))
    pooled = jnp.stack(rows, axis=-2)                      # (N, C, 7, 7)
    flat = pooled.reshape(N, -1)
    y = jnp.maximum(flat @ params["W1"].T + params["b1"], 0.0)
    y = jnp.maximum(y @ params["W2"].T + params["b2"], 0.0)
    return y, pooled[:, 0]


# --------------------------------------------------------------------------

if __name__ == "__main__":
    key = jax.random.PRNGKey(0)
    key, kx = jax.random.split(key)

    # Small shapes consistent with the module: batch=2, 3-channel 32x32 input
    # (two 2x2 maxpools -> 8x8 feature map >= the 7x7 adaptive-pool target).
    x = jax.random.normal(kx, (2, 3, 32, 32), jnp.float32)

    cfg = [1, 1, 'M', 1, 'M']                      # narrow (width-1) VGG features
    params = make_narrow_vgg_params(key, cfg, in_channels=3)

    y, pooled = narrow_vgg_forward_pallas(x, params, cfg, return_pooled=True)
    y = jax.block_until_ready(y)
    pooled = jax.block_until_ready(pooled)

    y_ref, pooled_ref = narrow_vgg_reference(x, params, cfg)
    np.testing.assert_allclose(np.asarray(pooled), np.asarray(pooled_ref),
                               rtol=5e-2, atol=5e-2)
    np.testing.assert_allclose(np.asarray(y), np.asarray(y_ref),
                               rtol=5e-2, atol=5e-2)

    print("KERNEL_OK")
</pallas_src>

<mosaic_0001>
module attributes {stable_mosaic.version = 11 : i64} {
  func.func @kernel(%arg0: i32, %arg1: memref<3xf32, #tpu.memory_space<smem>>, %arg2: memref<1x3x32x128xf32, #tpu.memory_space<vmem>>, %arg3: memref<3x3x128x128xf32, #tpu.memory_space<vmem>>, %arg4: memref<1x3x128x128xf32, #tpu.memory_space<vmem>>, %arg5: memref<128x64xf32, #tpu.memory_space<vmem>>, %arg6: memref<128x64xf32, #tpu.memory_space<vmem>>, %arg7: memref<16x32xf32, #tpu.memory_space<vmem>>, %arg8: memref<16x32xf32, #tpu.memory_space<vmem>>, %arg9: memref<1x3x64x64xf32, #tpu.memory_space<vmem>>, %arg10: memref<64x32xf32, #tpu.memory_space<vmem>>, %arg11: memref<64x32xf32, #tpu.memory_space<vmem>>, %arg12: memref<8x16xf32, #tpu.memory_space<vmem>>, %arg13: memref<8x16xf32, #tpu.memory_space<vmem>>, %arg14: memref<7x8xf32, #tpu.memory_space<vmem>>, %arg15: memref<32x28xf32, #tpu.memory_space<vmem>>, %arg16: memref<1x7x28xf32, #tpu.memory_space<vmem>>) attributes {dimension_semantics = [#tpu.dimension_semantics<parallel>], iteration_bounds = array<i64: 1>, scalar_prefetch = 0 : i64, scratch_operands = 0 : i64, tpu.core_type = #tpu.core_type<tc>, window_params = [{transform_indices = @transform_0, window_bounds = array<i64: 3>}, {transform_indices = @transform_1, window_bounds = array<i64: 1, 3, 32, 128>}, {pipeline_mode = #tpu.pipeline_mode<synchronous>, transform_indices = @transform_2, window_bounds = array<i64: 3, 3, 128, 128>}, {pipeline_mode = #tpu.pipeline_mode<synchronous>, transform_indices = @transform_3, window_bounds = array<i64: 1, 3, 128, 128>}, {pipeline_mode = #tpu.pipeline_mode<synchronous>, transform_indices = @transform_4, window_bounds = array<i64: 128, 64>}, {pipeline_mode = #tpu.pipeline_mode<synchronous>, transform_indices = @transform_5, window_bounds = array<i64: 128, 64>}, {pipeline_mode = #tpu.pipeline_mode<synchronous>, transform_indices = @transform_6, window_bounds = array<i64: 16, 32>}, {pipeline_mode = #tpu.pipeline_mode<synchronous>, transform_indices = @transform_7, window_bounds = array<i64: 16, 32>}, {pipeline_mode = #tpu.pipeline_mode<synchronous>, transform_indices = @transform_8, window_bounds = array<i64: 1, 3, 64, 64>}, {pipeline_mode = #tpu.pipeline_mode<synchronous>, transform_indices = @transform_9, window_bounds = array<i64: 64, 32>}, {pipeline_mode = #tpu.pipeline_mode<synchronous>, transform_indices = @transform_10, window_bounds = array<i64: 64, 32>}, {pipeline_mode = #tpu.pipeline_mode<synchronous>, transform_indices = @transform_11, window_bounds = array<i64: 8, 16>}, {pipeline_mode = #tpu.pipeline_mode<synchronous>, transform_indices = @transform_12, window_bounds = array<i64: 8, 16>}, {pipeline_mode = #tpu.pipeline_mode<synchronous>, transform_indices = @transform_13, window_bounds = array<i64: 7, 8>}, {pipeline_mode = #tpu.pipeline_mode<synchronous>, transform_indices = @transform_14, window_bounds = array<i64: 32, 28>}, {transform_indices = @transform_15, window_bounds = array<i64: 1, 7, 28>}]} {
    %c0 = arith.constant 0 : index
    %c0_0 = arith.constant 0 : index
    %c0_1 = arith.constant 0 : index
    %c0_2 = arith.constant 0 : index
    %0 = vector.load %arg2[%c0, %c0_0, %c0_1, %c0_2] : memref<1x3x32x128xf32, #tpu.memory_space<vmem>>, vector<1x1x32x128xf32>
    %1 = vector.shape_cast %0 : vector<1x1x32x128xf32> to vector<32x128xf32>
    %c0_3 = arith.constant 0 : index
    %c1 = arith.constant 1 : index
    %c0_4 = arith.constant 0 : index
    %c0_5 = arith.constant 0 : index
    %2 = vector.load %arg2[%c0_3, %c1, %c0_4, %c0_5] : memref<1x3x32x128xf32, #tpu.memory_space<vmem>>, vector<1x1x32x128xf32>
    %3 = vector.shape_cast %2 : vector<1x1x32x128xf32> to vector<32x128xf32>
    %c0_6 = arith.constant 0 : index
    %c2 = arith.constant 2 : index
    %c0_7 = arith.constant 0 : index
    %c0_8 = arith.constant 0 : index
    %4 = vector.load %arg2[%c0_6, %c2, %c0_7, %c0_8] : memref<1x3x32x128xf32, #tpu.memory_space<vmem>>, vector<1x1x32x128xf32>
    %5 = vector.shape_cast %4 : vector<1x1x32x128xf32> to vector<32x128xf32>
    %c0_9 = arith.constant 0 : index
    %c0_10 = arith.constant 0 : index
    %c0_11 = arith.constant 0 : index
    %c0_12 = arith.constant 0 : index
    %6 = vector.load %arg3[%c0_9, %c0_10, %c0_11, %c0_12] : memref<3x3x128x128xf32, #tpu.memory_space<vmem>>, vector<1x1x128x128xf32>
    %7 = vector.shape_cast %6 : vector<1x1x128x128xf32> to vector<128x128xf32>
    %cst = arith.constant dense<0.000000e+00> : vector<32x128xf32>
    %8 = tpu.matmul %1, %7, %cst {dimension_numbers = #tpu.dot_dimension_numbers<[1], [0], [0], [1], [0, 0, 1, 1], [], []>} : vector<32x128xf32>, vector<128x128xf32>, vector<32x128xf32> -> vector<32x128xf32>
    %cst_13 = arith.constant 0.000000e+00 : f32
    %9 = vector.broadcast %cst_13 : f32 to vector<1x128xf32>
    %10 = vector.extract_strided_slice %8 {offsets = [0, 0], sizes = [31, 128], strides = [1, 1]} : vector<32x128xf32> to vector<31x128xf32>
    %11 = tpu.concatenate %9, %10 in 0 : vector<1x128xf32>, vector<31x128xf32> -> vector<32x128xf32>
    %c0_14 = arith.constant 0 : index
    %c1_15 = arith.constant 1 : index
    %c0_16 = arith.constant 0 : index
    %c0_17 = arith.constant 0 : index
    %12 = vector.load %arg3[%c0_14, %c1_15, %c0_16, %c0_17] : memref<3x3x128x128xf32, #tpu.memory_space<vmem>>, vector<1x1x128x128xf32>
    %13 = vector.shape_cast %12 : vector<1x1x128x128xf32> to vector<128x128xf32>
    %cst_18 = arith.constant dense<0.000000e+00> : vector<32x128xf32>
    %14 = tpu.matmul %1, %13, %cst_18 {dimension_numbers = #tpu.dot_dimension_numbers<[1], [0], [0], [1], [0, 0, 1, 1], [], []>} : vector<32x128xf32>, vector<128x128xf32>, vector<32x128xf32> -> vector<32x128xf32>
    %15 = arith.addf %11, %14 : vector<32x128xf32>
    %c0_19 = arith.constant 0 : index
    %c2_20 = arith.constant 2 : index
    %c0_21 = arith.constant 0 : index
    %c0_22 = arith.constant 0 : index
    %16 = vector.load %arg3[%c0_19, %c2_20, %c0_21, %c0_22] : memref<3x3x128x128xf32, #tpu.memory_space<vmem>>, vector<1x1x128x128xf32>
    %17 = vector.shape_cast %16 : vector<1x1x128x128xf32> to vector<128x128xf32>
    %cst_23 = arith.constant dense<0.000000e+00> : vector<32x128xf32>
    %18 = tpu.matmul %1, %17, %cst_23 {dimension_numbers = #tpu.dot_dimension_numbers<[1], [0], [0], [1], [0, 0, 1, 1], [], []>} : vector<32x128xf32>, vector<128x128xf32>, vector<32x128xf32> -> vector<32x128xf32>
    %cst_24 = arith.constant 0.000000e+00 : f32
    %19 = vector.broadcast %cst_24 : f32 to vector<1x128xf32>
    %20 = vector.extract_strided_slice %18 {offsets = [1, 0], sizes = [31, 128], strides = [1, 1]} : vector<32x128xf32> to vector<31x128xf32>
    %21 = tpu.concatenate %20, %19 in 0 : vector<31x128xf32>, vector<1x128xf32> -> vector<32x128xf32>
    %22 = arith.addf %15, %21 : vector<32x128xf32>
    %c1_25 = arith.constant 1 : index
    %c0_26 = arith.constant 0 : index
    %c0_27 = arith.constant 0 : index
    %c0_28 = arith.constant 0 : index
    %23 = vector.load %arg3[%c1_25, %c0_26, %c0_27, %c0_28] : memref<3x3x128x128xf32, #tpu.memory_space<vmem>>, vector<1x1x128x128xf32>
    %24 = vector.shape_cast %23 : vector<1x1x128x128xf32> to vector<128x128xf32>
    %cst_29 = arith.constant dense<0.000000e+00> : vector<32x128xf32>
    %25 = tpu.matmul %3, %24, %cst_29 {dimension_numbers = #tpu.dot_dimension_numbers<[1], [0], [0], [1], [0, 0, 1, 1], [], []>} : vector<32x128xf32>, vector<128x128xf32>, vector<32x128xf32> -> vector<32x128xf32>
    %cst_30 = arith.constant 0.000000e+00 : f32
    %26 = vector.broadcast %cst_30 : f32 to vector<1x128xf32>
    %27 = vector.extract_strided_slice %25 {offsets = [0, 0], sizes = [31, 128], strides = [1, 1]} : vector<32x128xf32> to vector<31x128xf32>
    %28 = tpu.concatenate %26, %27 in 0 : vector<1x128xf32>, vector<31x128xf32> -> vector<32x128xf32>
    %29 = arith.addf %22, %28 : vector<32x128xf32>
    %c1_31 = arith.constant 1 : index
    %c1_32 = arith.constant 1 : index
    %c0_33 = arith.constant 0 : index
    %c0_34 = arith.constant 0 : index
    %30 = vector.load %arg3[%c1_31, %c1_32, %c0_33, %c0_34] : memref<3x3x128x128xf32, #tpu.memory_space<vmem>>, vector<1x1x128x128xf32>
    %31 = vector.shape_cast %30 : vector<1x1x128x128xf32> to vector<128x128xf32>
    %cst_35 = arith.constant dense<0.000000e+00> : vector<32x128xf32>
    %32 = tpu.matmul %3, %31, %cst_35 {dimension_numbers = #tpu.dot_dimension_numbers<[1], [0], [0], [1], [0, 0, 1, 1], [], []>} : vector<32x128xf32>, vector<128x128xf32>, vector<32x128xf32> -> vector<32x128xf32>
    %33 = arith.addf %29, %32 : vector<32x128xf32>
    %c1_36 = arith.constant 1 : index
    %c2_37 = arith.constant 2 : index
    %c0_38 = arith.constant 0 : index
    %c0_39 = arith.constant 0 : index
    %34 = vector.load %arg3[%c1_36, %c2_37, %c0_38, %c0_39] : memref<3x3x128x128xf32, #tpu.memory_space<vmem>>, vector<1x1x128x128xf32>
    %35 = vector.shape_cast %34 : vector<1x1x128x128xf32> to vector<128x128xf32>
    %cst_40 = arith.constant dense<0.000000e+00> : vector<32x128xf32>
    %36 = tpu.matmul %3, %35, %cst_40 {dimension_numbers = #tpu.dot_dimension_numbers<[1], [0], [0], [1], [0, 0, 1, 1], [], []>} : vector<32x128xf32>, vector<128x128xf32>, vector<32x128xf32> -> vector<32x128xf32>
    %cst_41 = arith.constant 0.000000e+00 : f32
    %37 = vector.broadcast %cst_41 : f32 to vector<1x128xf32>
    %38 = vector.extract_strided_slice %36 {offsets = [1, 0], sizes = [31, 128], strides = [1, 1]} : vector<32x128xf32> to vector<31x128xf32>
    %39 = tpu.concatenate %38, %37 in 0 : vector<31x128xf32>, vector<1x128xf32> -> vector<32x128xf32>
    %40 = arith.addf %33, %39 : vector<32x128xf32>
    %c2_42 = arith.constant 2 : index
    %c0_43 = arith.constant 0 : index
    %c0_44 = arith.constant 0 : index
    %c0_45 = arith.constant 0 : index
    %41 = vector.load %arg3[%c2_42, %c0_43, %c0_44, %c0_45] : memref<3x3x128x128xf32, #tpu.memory_space<vmem>>, vector<1x1x128x128xf32>
    %42 = vector.shape_cast %41 : vector<1x1x128x128xf32> to vector<128x128xf32>
    %cst_46 = arith.constant dense<0.000000e+00> : vector<32x128xf32>
    %43 = tpu.matmul %5, %42, %cst_46 {dimension_numbers = #tpu.dot_dimension_numbers<[1], [0], [0], [1], [0, 0, 1, 1], [], []>} : vector<32x128xf32>, vector<128x128xf32>, vector<32x128xf32> -> vector<32x128xf32>
    %cst_47 = arith.constant 0.000000e+00 : f32
    %44 = vector.broadcast %cst_47 : f32 to vector<1x128xf32>
    %45 = vector.extract_strided_slice %43 {offsets = [0, 0], sizes = [31, 128], strides = [1, 1]} : vector<32x128xf32> to vector<31x128xf32>
    %46 = tpu.concatenate %44, %45 in 0 : vector<1x128xf32>, vector<31x128xf32> -> vector<32x128xf32>
    %47 = arith.addf %40, %46 : vector<32x128xf32>
    %c2_48 = arith.constant 2 : index
    %c1_49 = arith.constant 1 : index
    %c0_50 = arith.constant 0 : index
    %c0_51 = arith.constant 0 : index
    %48 = vector.load %arg3[%c2_48, %c1_49, %c0_50, %c0_51] : memref<3x3x128x128xf32, #tpu.memory_space<vmem>>, vector<1x1x128x128xf32>
    %49 = vector.shape_cast %48 : vector<1x1x128x128xf32> to vector<128x128xf32>
    %cst_52 = arith.constant dense<0.000000e+00> : vector<32x128xf32>
    %50 = tpu.matmul %5, %49, %cst_52 {dimension_numbers = #tpu.dot_dimension_numbers<[1], [0], [0], [1], [0, 0, 1, 1], [], []>} : vector<32x128xf32>, vector<128x128xf32>, vector<32x128xf32> -> vector<32x128xf32>
    %51 = arith.addf %47, %50 : vector<32x128xf32>
    %c2_53 = arith.constant 2 : index
    %c2_54 = arith.constant 2 : index
    %c0_55 = arith.constant 0 : index
    %c0_56 = arith.constant 0 : index
    %52 = vector.load %arg3[%c2_53, %c2_54, %c0_55, %c0_56] : memref<3x3x128x128xf32, #tpu.memory_space<vmem>>, vector<1x1x128x128xf32>
    %53 = vector.shape_cast %52 : vector<1x1x128x128xf32> to vector<128x128xf32>
    %cst_57 = arith.constant dense<0.000000e+00> : vector<32x128xf32>
    %54 = tpu.matmul %5, %53, %cst_57 {dimension_numbers = #tpu.dot_dimension_numbers<[1], [0], [0], [1], [0, 0, 1, 1], [], []>} : vector<32x128xf32>, vector<128x128xf32>, vector<32x128xf32> -> vector<32x128xf32>
    %cst_58 = arith.constant 0.000000e+00 : f32
    %55 = vector.broadcast %cst_58 : f32 to vector<1x128xf32>
    %56 = vector.extract_strided_slice %54 {offsets = [1, 0], sizes = [31, 128], strides = [1, 1]} : vector<32x128xf32> to vector<31x128xf32>
    %57 = tpu.concatenate %56, %55 in 0 : vector<31x128xf32>, vector<1x128xf32> -> vector<32x128xf32>
    %58 = arith.addf %51, %57 : vector<32x128xf32>
    %c0_59 = arith.constant 0 : index
    %59 = memref.load %arg1[%c0_59] : memref<3xf32, #tpu.memory_space<smem>>
    %60 = vector.broadcast %59 : f32 to vector<32x128xf32>
    %61 = arith.addf %58, %60 : vector<32x128xf32>
    %cst_60 = arith.constant 0.000000e+00 : f32
    %62 = vector.broadcast %cst_60 : f32 to vector<32x128xf32>
    %63 = arith.maximumf %61, %62 : vector<32x128xf32>
    %c0_61 = arith.constant 0 : index
    %c0_62 = arith.constant 0 : index
    %c0_63 = arith.constant 0 : index
    %c0_64 = arith.constant 0 : index
    %64 = vector.load %arg4[%c0_61, %c0_62, %c0_63, %c0_64] : memref<1x3x128x128xf32, #tpu.memory_space<vmem>>, vector<1x1x128x128xf32>
    %65 = vector.shape_cast %64 : vector<1x1x128x128xf32> to vector<128x128xf32>
    %cst_65 = arith.constant dense<0.000000e+00> : vector<32x128xf32>
    %66 = tpu.matmul %63, %65, %cst_65 {dimension_numbers = #tpu.dot_dimension_numbers<[1], [0], [0], [1], [0, 0, 1, 1], [], []>} : vector<32x128xf32>, vector<128x128xf32>, vector<32x128xf32> -> vector<32x128xf32>
    %cst_66 = arith.constant 0.000000e+00 : f32
    %67 = vector.broadcast %cst_66 : f32 to vector<1x128xf32>
    %68 = vector.extract_strided_slice %66 {offsets = [0, 0], sizes = [31, 128], strides = [1, 1]} : vector<32x128xf32> to vector<31x128xf32>
    %69 = tpu.concatenate %67, %68 in 0 : vector<1x128xf32>, vector<31x128xf32> -> vector<32x128xf32>
    %c0_67 = arith.constant 0 : index
    %c1_68 = arith.constant 1 : index
    %c0_69 = arith.constant 0 : index
    %c0_70 = arith.constant 0 : index
    %70 = vector.load %arg4[%c0_67, %c1_68, %c0_69, %c0_70] : memref<1x3x128x128xf32, #tpu.memory_space<vmem>>, vector<1x1x128x128xf32>
    %71 = vector.shape_cast %70 : vector<1x1x128x128xf32> to vector<128x128xf32>
    %cst_71 = arith.constant dense<0.000000e+00> : vector<32x128xf32>
    %72 = tpu.matmul %63, %71, %cst_71 {dimension_numbers = #tpu.dot_dimension_numbers<[1], [0], [0], [1], [0, 0, 1, 1], [], []>} : vector<32x128xf32>, vector<128x128xf32>, vector<32x128xf32> -> vector<32x128xf32>
    %73 = arith.addf %69, %72 : vector<32x128xf32>
    %c0_72 = arith.constant 0 : index
    %c2_73 = arith.constant 2 : index
    %c0_74 = arith.constant 0 : index
    %c0_75 = arith.constant 0 : index
    %74 = vector.load %arg4[%c0_72, %c2_73, %c0_74, %c0_75] : memref<1x3x128x128xf32, #tpu.memory_space<vmem>>, vector<1x1x128x128xf32>
    %75 = vector.shape_cast %74 : vector<1x1x128x128xf32> to vector<128x128xf32>
    %cst_76 = arith.constant dense<0.000000e+00> : vector<32x128xf32>
    %76 = tpu.matmul %63, %75, %cst_76 {dimension_numbers = #tpu.dot_dimension_numbers<[1], [0], [0], [1], [0, 0, 1, 1], [], []>} : vector<32x128xf32>, vector<128x128xf32>, vector<32x128xf32> -> vector<32x128xf32>
    %cst_77 = arith.constant 0.000000e+00 : f32
    %77 = vector.broadcast %cst_77 : f32 to vector<1x128xf32>
    %78 = vector.extract_strided_slice %76 {offsets = [1, 0], sizes = [31, 128], strides = [1, 1]} : vector<32x128xf32> to vector<31x128xf32>
    %79 = tpu.concatenate %78, %77 in 0 : vector<31x128xf32>, vector<1x128xf32> -> vector<32x128xf32>
    %80 = arith.addf %73, %79 : vector<32x128xf32>
    %c1_78 = arith.constant 1 : index
    %81 = memref.load %arg1[%c1_78] : memref<3xf32, #tpu.memory_space<smem>>
    %82 = vector.broadcast %81 : f32 to vector<32x128xf32>
    %83 = arith.addf %80, %82 : vector<32x128xf32>
    %cst_79 = arith.constant 0.000000e+00 : f32
    %84 = vector.broadcast %cst_79 : f32 to vector<32x128xf32>
    %85 = arith.maximumf %83, %84 : vector<32x128xf32>
    %c0_80 = arith.constant 0 : index
    %c0_81 = arith.constant 0 : index
    %86 = vector.load %arg5[%c0_80, %c0_81] : memref<128x64xf32, #tpu.memory_space<vmem>>, vector<128x64xf32>
    %c0_82 = arith.constant 0 : index
    %c0_83 = arith.constant 0 : index
    %87 = vector.load %arg6[%c0_82, %c0_83] : memref<128x64xf32, #tpu.memory_space<vmem>>, vector<128x64xf32>
    %c0_84 = arith.constant 0 : index
    %c0_85 = arith.constant 0 : index
    %88 = vector.load %arg7[%c0_84, %c0_85] : memref<16x32xf32, #tpu.memory_space<vmem>>, vector<16x32xf32>
    %c0_86 = arith.constant 0 : index
    %c0_87 = arith.constant 0 : index
    %89 = vector.load %arg8[%c0_86, %c0_87] : memref<16x32xf32, #tpu.memory_space<vmem>>, vector<16x32xf32>
    %cst_88 = arith.constant dense<0.000000e+00> : vector<32x64xf32>
    %90 = tpu.matmul %85, %86, %cst_88 {dimension_numbers = #tpu.dot_dimension_numbers<[1], [0], [0], [1], [0, 0, 1, 1], [], []>} : vector<32x128xf32>, vector<128x64xf32>, vector<32x64xf32> -> vector<32x64xf32>
    %cst_89 = arith.constant dense<0.000000e+00> : vector<32x64xf32>
    %91 = tpu.matmul %85, %87, %cst_89 {dimension_numbers = #tpu.dot_dimension_numbers<[1], [0], [0], [1], [0, 0, 1, 1], [], []>} : vector<32x128xf32>, vector<128x64xf32>, vector<32x64xf32> -> vector<32x64xf32>
    %92 = arith.maximumf %90, %91 : vector<32x64xf32>
    %cst_90 = arith.constant dense<0.000000e+00> : vector<16x64xf32>
    %93 = tpu.matmul %88, %92, %cst_90 {dimension_numbers = #tpu.dot_dimension_numbers<[1], [0], [0], [1], [0, 0, 1, 1], [], []>} : vector<16x32xf32>, vector<32x64xf32>, vector<16x64xf32> -> vector<16x64xf32>
    %cst_91 = arith.constant dense<0.000000e+00> : vector<16x64xf32>
    %94 = tpu.matmul %89, %92, %cst_91 {dimension_numbers = #tpu.dot_dimension_numbers<[1], [0], [0], [1], [0, 0, 1, 1], [], []>} : vector<16x32xf32>, vector<32x64xf32>, vector<16x64xf32> -> vector<16x64xf32>
    %95 = arith.maximumf %93, %94 : vector<16x64xf32>
    %c0_92 = arith.constant 0 : index
    %c0_93 = arith.constant 0 : index
    %c0_94 = arith.constant 0 : index
    %c0_95 = arith.constant 0 : index
    %96 = vector.load %arg9[%c0_92, %c0_93, %c0_94, %c0_95] : memref<1x3x64x64xf32, #tpu.memory_space<vmem>>, vector<1x1x64x64xf32>
    %97 = vector.shape_cast %96 : vector<1x1x64x64xf32> to vector<64x64xf32>
    %cst_96 = arith.constant dense<0.000000e+00> : vector<16x64xf32>
    %98 = tpu.matmul %95, %97, %cst_96 {dimension_numbers = #tpu.dot_dimension_numbers<[1], [0], [0], [1], [0, 0, 1, 1], [], []>} : vector<16x64xf32>, vector<64x64xf32>, vector<16x64xf32> -> vector<16x64xf32>
    %cst_97 = arith.constant 0.000000e+00 : f32
    %99 = vector.broadcast %cst_97 : f32 to vector<1x64xf32>
    %100 = vector.extract_strided_slice %98 {offsets = [0, 0], sizes = [15, 64], strides = [1, 1]} : vector<16x64xf32> to vector<15x64xf32>
    %101 = tpu.concatenate %99, %100 in 0 : vector<1x64xf32>, vector<15x64xf32> -> vector<16x64xf32>
    %c0_98 = arith.constant 0 : index
    %c1_99 = arith.constant 1 : index
    %c0_100 = arith.constant 0 : index
    %c0_101 = arith.constant 0 : index
    %102 = vector.load %arg9[%c0_98, %c1_99, %c0_100, %c0_101] : memref<1x3x64x64xf32, #tpu.memory_space<vmem>>, vector<1x1x64x64xf32>
    %103 = vector.shape_cast %102 : vector<1x1x64x64xf32> to vector<64x64xf32>
    %cst_102 = arith.constant dense<0.000000e+00> : vector<16x64xf32>
    %104 = tpu.matmul %95, %103, %cst_102 {dimension_numbers = #tpu.dot_dimension_numbers<[1], [0], [0], [1], [0, 0, 1, 1], [], []>} : vector<16x64xf32>, vector<64x64xf32>, vector<16x64xf32> -> vector<16x64xf32>
    %105 = arith.addf %101, %104 : vector<16x64xf32>
    %c0_103 = arith.constant 0 : index
    %c2_104 = arith.constant 2 : index
    %c0_105 = arith.constant 0 : index
    %c0_106 = arith.constant 0 : index
    %106 = vector.load %arg9[%c0_103, %c2_104, %c0_105, %c0_106] : memref<1x3x64x64xf32, #tpu.memory_space<vmem>>, vector<1x1x64x64xf32>
    %107 = vector.shape_cast %106 : vector<1x1x64x64xf32> to vector<64x64xf32>
    %cst_107 = arith.constant dense<0.000000e+00> : vector<16x64xf32>
    %108 = tpu.matmul %95, %107, %cst_107 {dimension_numbers = #tpu.dot_dimension_numbers<[1], [0], [0], [1], [0, 0, 1, 1], [], []>} : vector<16x64xf32>, vector<64x64xf32>, vector<16x64xf32> -> vector<16x64xf32>
    %cst_108 = arith.constant 0.000000e+00 : f32
    %109 = vector.broadcast %cst_108 : f32 to vector<1x64xf32>
    %110 = vector.extract_strided_slice %108 {offsets = [1, 0], sizes = [15, 64], strides = [1, 1]} : vector<16x64xf32> to vector<15x64xf32>
    %111 = tpu.concatenate %110, %109 in 0 : vector<15x64xf32>, vector<1x64xf32> -> vector<16x64xf32>
    %112 = arith.addf %105, %111 : vector<16x64xf32>
    %c2_109 = arith.constant 2 : index
    %113 = memref.load %arg1[%c2_109] : memref<3xf32, #tpu.memory_space<smem>>
    %114 = vector.broadcast %113 : f32 to vector<16x64xf32>
    %115 = arith.addf %112, %114 : vector<16x64xf32>
    %cst_110 = arith.constant 0.000000e+00 : f32
    %116 = vector.broadcast %cst_110 : f32 to vector<16x64xf32>
    %117 = arith.maximumf %115, %116 : vector<16x64xf32>
    %c0_111 = arith.constant 0 : index
    %c0_112 = arith.constant 0 : index
    %118 = vector.load %arg10[%c0_111, %c0_112] : memref<64x32xf32, #tpu.memory_space<vmem>>, vector<64x32xf32>
    %c0_113 = arith.constant 0 : index
    %c0_114 = arith.constant 0 : index
    %119 = vector.load %arg11[%c0_113, %c0_114] : memref<64x32xf32, #tpu.memory_space<vmem>>, vector<64x32xf32>
    %c0_115 = arith.constant 0 : index
    %c0_116 = arith.constant 0 : index
    %120 = vector.load %arg12[%c0_115, %c0_116] : memref<8x16xf32, #tpu.memory_space<vmem>>, vector<8x16xf32>
    %c0_117 = arith.constant 0 : index
    %c0_118 = arith.constant 0 : index
    %121 = vector.load %arg13[%c0_117, %c0_118] : memref<8x16xf32, #tpu.memory_space<vmem>>, vector<8x16xf32>
    %cst_119 = arith.constant dense<0.000000e+00> : vector<16x32xf32>
    %122 = tpu.matmul %117, %118, %cst_119 {dimension_numbers = #tpu.dot_dimension_numbers<[1], [0], [0], [1], [0, 0, 1, 1], [], []>} : vector<16x64xf32>, vector<64x32xf32>, vector<16x32xf32> -> vector<16x32xf32>
    %cst_120 = arith.constant dense<0.000000e+00> : vector<16x32xf32>
    %123 = tpu.matmul %117, %119, %cst_120 {dimension_numbers = #tpu.dot_dimension_numbers<[1], [0], [0], [1], [0, 0, 1, 1], [], []>} : vector<16x64xf32>, vector<64x32xf32>, vector<16x32xf32> -> vector<16x32xf32>
    %124 = arith.maximumf %122, %123 : vector<16x32xf32>
    %cst_121 = arith.constant dense<0.000000e+00> : vector<8x32xf32>
    %125 = tpu.matmul %120, %124, %cst_121 {dimension_numbers = #tpu.dot_dimension_numbers<[1], [0], [0], [1], [0, 0, 1, 1], [], []>} : vector<8x16xf32>, vector<16x32xf32>, vector<8x32xf32> -> vector<8x32xf32>
    %cst_122 = arith.constant dense<0.000000e+00> : vector<8x32xf32>
    %126 = tpu.matmul %121, %124, %cst_122 {dimension_numbers = #tpu.dot_dimension_numbers<[1], [0], [0], [1], [0, 0, 1, 1], [], []>} : vector<8x16xf32>, vector<16x32xf32>, vector<8x32xf32> -> vector<8x32xf32>
    %127 = arith.maximumf %125, %126 : vector<8x32xf32>
    %c0_123 = arith.constant 0 : index
    %c0_124 = arith.constant 0 : index
    %128 = vector.load %arg14[%c0_123, %c0_124] : memref<7x8xf32, #tpu.memory_space<vmem>>, vector<7x8xf32>
    %c0_125 = arith.constant 0 : index
    %c0_126 = arith.constant 0 : index
    %129 = vector.load %arg15[%c0_125, %c0_126] : memref<32x28xf32, #tpu.memory_space<vmem>>, vector<32x28xf32>
    %cst_127 = arith.constant dense<0.000000e+00> : vector<7x32xf32>
    %130 = tpu.matmul %128, %127, %cst_127 {dimension_numbers = #tpu.dot_dimension_numbers<[1], [0], [0], [1], [0, 0, 1, 1], [], []>} : vector<7x8xf32>, vector<8x32xf32>, vector<7x32xf32> -> vector<7x32xf32>
    %cst_128 = arith.constant dense<0.000000e+00> : vector<7x28xf32>
    %131 = tpu.matmul %130, %129, %cst_128 {dimension_numbers = #tpu.dot_dimension_numbers<[1], [0], [0], [1], [0, 0, 1, 1], [], []>} : vector<7x32xf32>, vector<32x28xf32>, vector<7x28xf32> -> vector<7x28xf32>
    %c0_129 = arith.constant 0 : index
    %c0_130 = arith.constant 0 : index
    %c0_131 = arith.constant 0 : index
    %132 = vector.load %arg16[%c0_129, %c0_130, %c0_131] : memref<1x7x28xf32, #tpu.memory_space<vmem>>, vector<1x7x28xf32>
    %133 = vector.shape_cast %132 : vector<1x7x28xf32> to vector<7x28xf32>
    %134 = vector.shape_cast %131 : vector<7x28xf32> to vector<1x7x28xf32>
    tpu.vector_store %arg16[%c0_129, %c0_130, %c0_131], %134 {strides = array<i32>} : memref<1x7x28xf32, #tpu.memory_space<vmem>>, vector<1x7x28xf32>,
    return
  }
  func.func @transform_0(%arg0: i32) -> i32 {
    %c0_i32 = arith.constant 0 : i32
    %c0_i32_0 = arith.constant 0 : i32
    return %c0_i32 : i32
  }
  func.func @transform_1(%arg0: i32) -> (i32, i32, i32, i32) {
    %c0_i32 = arith.constant 0 : i32
    %c0_i32_0 = arith.constant 0 : i32
    %c0_i32_1 = arith.constant 0 : i32
    %c0_i32_2 = arith.constant 0 : i32
    return %arg0, %c0_i32, %c0_i32_0, %c0_i32_1 : i32, i32, i32, i32
  }
  func.func @transform_2(%arg0: i32) -> (i32, i32, i32, i32) {
    %c0_i32 = arith.constant 0 : i32
    %c0_i32_0 = arith.constant 0 : i32
    %c0_i32_1 = arith.constant 0 : i32
    %c0_i32_2 = arith.constant 0 : i32
    %c0_i32_3 = arith.constant 0 : i32
    return %c0_i32, %c0_i32_0, %c0_i32_1, %c0_i32_2 : i32, i32, i32, i32
  }
  func.func @transform_3(%arg0: i32) -> (i32, i32, i32, i32) {
    %c0_i32 = arith.constant 0 : i32
    %c0_i32_0 = arith.constant 0 : i32
    %c0_i32_1 = arith.constant 0 : i32
    %c0_i32_2 = arith.constant 0 : i32
    %c0_i32_3 = arith.constant 0 : i32
    return %c0_i32, %c0_i32_0, %c0_i32_1, %c0_i32_2 : i32, i32, i32, i32
  }
  func.func @transform_4(%arg0: i32) -> (i32, i32) {
    %c0_i32 = arith.constant 0 : i32
    %c0_i32_0 = arith.constant 0 : i32
    %c0_i32_1 = arith.constant 0 : i32
    return %c0_i32, %c0_i32_0 : i32, i32
  }
  func.func @transform_5(%arg0: i32) -> (i32, i32) {
    %c0_i32 = arith.constant 0 : i32
    %c0_i32_0 = arith.constant 0 : i32
    %c0_i32_1 = arith.constant 0 : i32
    return %c0_i32, %c0_i32_0 : i32, i32
  }
  func.func @transform_6(%arg0: i32) -> (i32, i32) {
    %c0_i32 = arith.constant 0 : i32
    %c0_i32_0 = arith.constant 0 : i32
    %c0_i32_1 = arith.constant 0 : i32
    return %c0_i32, %c0_i32_0 : i32, i32
  }
  func.func @transform_7(%arg0: i32) -> (i32, i32) {
    %c0_i32 = arith.constant 0 : i32
    %c0_i32_0 = arith.constant 0 : i32
    %c0_i32_1 = arith.constant 0 : i32
    return %c0_i32, %c0_i32_0 : i32, i32
  }
  func.func @transform_8(%arg0: i32) -> (i32, i32, i32, i32) {
    %c0_i32 = arith.constant 0 : i32
    %c0_i32_0 = arith.constant 0 : i32
    %c0_i32_1 = arith.constant 0 : i32
    %c0_i32_2 = arith.constant 0 : i32
    %c0_i32_3 = arith.constant 0 : i32
    return %c0_i32, %c0_i32_0, %c0_i32_1, %c0_i32_2 : i32, i32, i32, i32
  }
  func.func @transform_9(%arg0: i32) -> (i32, i32) {
    %c0_i32 = arith.constant 0 : i32
    %c0_i32_0 = arith.constant 0 : i32
    %c0_i32_1 = arith.constant 0 : i32
    return %c0_i32, %c0_i32_0 : i32, i32
  }
  func.func @transform_10(%arg0: i32) -> (i32, i32) {
    %c0_i32 = arith.constant 0 : i32
    %c0_i32_0 = arith.constant 0 : i32
    %c0_i32_1 = arith.constant 0 : i32
    return %c0_i32, %c0_i32_0 : i32, i32
  }
  func.func @transform_11(%arg0: i32) -> (i32, i32) {
    %c0_i32 = arith.constant 0 : i32
    %c0_i32_0 = arith.constant 0 : i32
    %c0_i32_1 = arith.constant 0 : i32
    return %c0_i32, %c0_i32_0 : i32, i32
  }
  func.func @transform_12(%arg0: i32) -> (i32, i32) {
    %c0_i32 = arith.constant 0 : i32
    %c0_i32_0 = arith.constant 0 : i32
    %c0_i32_1 = arith.constant 0 : i32
    return %c0_i32, %c0_i32_0 : i32, i32
  }
  func.func @transform_13(%arg0: i32) -> (i32, i32) {
    %c0_i32 = arith.constant 0 : i32
    %c0_i32_0 = arith.constant 0 : i32
    %c0_i32_1 = arith.constant 0 : i32
    return %c0_i32, %c0_i32_0 : i32, i32
  }
  func.func @transform_14(%arg0: i32) -> (i32, i32) {
    %c0_i32 = arith.constant 0 : i32
    %c0_i32_0 = arith.constant 0 : i32
    %c0_i32_1 = arith.constant 0 : i32
    return %c0_i32, %c0_i32_0 : i32, i32
  }
  func.func @transform_15(%arg0: i32) -> (i32, i32, i32) {
    %c0_i32 = arith.constant 0 : i32
    %c0_i32_0 = arith.constant 0 : i32
    %c0_i32_1 = arith.constant 0 : i32
    return %arg0, %c0_i32, %c0_i32_0 : i32, i32, i32
  }
}

</mosaic_0001>

<bundles_post_ra>
// kernel: tpu_custom_call.1
= control target key start
LH: loop header
LB: loop body
LE: loop exit
PB: predicated region body
PF: predicated region fallthrough
CT: control target
= control target key end

     0   :  { %20 = vsyncpa [#allocation4], 0  ;;  %s1963_s0 = inlined_call_operand.vmem [shape: f32[3], index: 0, kind: input, shape index: {}]   ;;  %s1964_s1 = inlined_call_operand.vmem [shape: f32[1,3,32,128], index: 1, kind: input, shape index: {}]   ;;  %s1965_s2 = inlined_call_operand.hbm [shape: f32[3,3,128,128], index: 2, kind: input, shape index: {}]   ;;  %s1966_s3 = inlined_call_operand.hbm [shape: f32[1,3,128,128], index: 3, kind: input, shape index: {}]   ;;  %s1967_s4 = inlined_call_operand.vmem [shape: f32[128,64], index: 4, kind: input, shape index: {}]   ;;  %s1968_s5 = inlined_call_operand.vmem [shape: f32[128,64], index: 5, kind: input, shape index: {}]   ;;  %s1969_s6 = inlined_call_operand.vmem [shape: f32[16,32], index: 6, kind: input, shape index: {}]   ;;  %s1970_s7 = inlined_call_operand.vmem [shape: f32[16,32], index: 7, kind: input, shape index: {}]   ;;  %s1971_s8 = inlined_call_operand.vmem [shape: f32[1,3,64,64], index: 8, kind: input, shape index: {}]   ;;  %s1972_s9 = inlined_call_operand.vmem [shape: f32[64,32], index: 9, kind: input, shape index: {}]   ;;  %s1973_s10 = inlined_call_operand.vmem [shape: f32[64,32], index: 10, kind: input, shape index: {}]   ;;  %s1974_s11 = inlined_call_operand.vmem [shape: f32[8,16], index: 11, kind: input, shape index: {}]   ;;  %s1975_s12 = inlined_call_operand.vmem [shape: f32[8,16], index: 12, kind: input, shape index: {}]   ;;  %s1976_s13 = inlined_call_operand.vmem [shape: f32[7,8], index: 13, kind: input, shape index: {}]   ;;  %s1977_s14 = inlined_call_operand.vmem [shape: f32[32,28], index: 14, kind: input, shape index: {}]   ;;  %s1978_s15 = inlined_call_operand.vmem [shape: f32[1,7,28], index: 15, kind: output, shape index: {}]  }
   0x1   :  { %21 = vsyncpa [#allocation3], 0  ;;  %s28_s20 = sshll.u32 %s1963_s0, 4  ;;  %s29_s20 = int_to_ptr.vmem [resolvable:$true] %s28_s20 }
   0x2   :  { %22 = vsyncpa [#allocation7], 0  ;;  %s38_s23 = sshll.u32 %s1965_s2, 4  ;;  %s1432_s24 = smov [#allocation2]   ;;  %s39_s23 = int_to_ptr.hbm [resolvable:$true] %s38_s23 }
   0x3   :  { %31 = dma.vmem_to_smem %s29_s20, 16, %s1432_s24, [#allocation4]  }
   0x4   :  { %s1433_s25 = smov [#allocation5]   ;;  %s1434_s27 = smov 128  }
   0x5   :  { %s40_s26 = sshll.u32 %s1433_s25, 4  ;;  %s1435_s28 = smov 8   ;;  %s41_s26 = int_to_ptr.vmem [resolvable:$true] %s40_s26 }
   0x6   :  { %46 = dma.hbm_to_vmem [thread:$0]  %s39_s23, 18432, %s41_s26, [#allocation3], %s1434_s27, %s1434_s27, %s1435_s28  }
   0x7   :  { %s51_s16 = sshll.u32 %s1966_s3, 4  ;;  %s1436_s0 = smov [#allocation6]   ;;  %s52_s16 = int_to_ptr.hbm [resolvable:$true] %s51_s16 }
   0x8   :  { %s53_s17 = sshll.u32 %s1436_s0, 4  ;;  %s54_s17 = int_to_ptr.vmem [resolvable:$true] %s53_s17 }
   0x9   :  { %59 = dma.hbm_to_vmem [thread:$0]  %s52_s16, 6144, %s54_s17, [#allocation7], %s1434_s27, %s1434_s27, %s1435_s28  }
   0xa   :  { %1426 = dma.done.wait [#allocation4], 16  }
   0xb   :  { %1427 = vsyncadd [#allocation4], 4294967280 }
   0xc   :  { %1428 = dma.done.wait [#allocation3], 18432  }
   0xd   :  { %1429 = vsyncadd [#allocation3], 4294948864 }
   0xe   :  { %1430 = dma.done.wait [#allocation7], 6144  }
   0xf   :  { %1431 = vsyncadd [#allocation7], 4294961152 }
  0x10   :  { %94 = sfence }
  0x11   :  { %v124_v0 = vld [vmem:[#allocation5 + $0x78] sm:$0xff]  ;;  %v123_v3 = vld [vmem:[#allocation5 + $0x70] sm:$0xff]  ;;  %v122_v7 = vld [vmem:[#allocation5 + $0x68] sm:$0xff]  ;;  %vm158_vm0 = vcmask 1040384   ;;  %vm271_vm1 = vcmask 1046528   ;;  %s1325_s29 = sld [smem:[#allocation2 + $0x1]] }
  0x12   :  { %v187_v1 = vld [vmem:[#allocation5 + $0xf8] sm:$0xff]  ;;  %125 = vmatpush.msra.mxu0 %v124_v0  ;;  %v186_v4 = vld [vmem:[#allocation5 + $0xf0] sm:$0xff]  ;;  %v185_v8 = vld [vmem:[#allocation5 + $0xe8] sm:$0xff]  ;;  %vm947_vm2 = vcmask 261120   ;;  %vm1016_vm3 = vcmask 523264   ;;  %vm1208_vm4 = vcmask 130048  }
  0x13   :  { %v237_v2 = vld [vmem:[#allocation5 + $0x178] sm:$0xff]  ;;  %188 = vmatpush.msra.mxu1 %v187_v1  ;;  %v236_v5 = vld [vmem:[#allocation5 + $0x170] sm:$0xff]  ;;  %v235_v9 = vld [vmem:[#allocation5 + $0x168] sm:$0xff]  ;;  %vm1261_vm5 = vcmask 64512   ;;  %vm1308_vm6 = vcmask 227328  }
  0x14   :  { %238 = vmatpush.msra.mxu2 %v237_v2  ;;  %v304_v6 = vld [vmem:[#allocation5 + $0x1f8] sm:$0xff]  ;;  %126 = vmatpush.msra.mxu0 %v123_v3  ;;  %v303_v10 = vld [vmem:[#allocation5 + $0x1f0] sm:$0xff]  ;;  %v121_v11 = vld [vmem:[#allocation5 + $0x60] sm:$0xff] }
  0x15   :  { %189 = vmatpush.msra.mxu1 %v186_v4  ;;  %305 = vmatpush.msra.mxu3 %v304_v6  ;;  %v184_v12 = vld [vmem:[#allocation5 + $0xe0] sm:$0xff]  ;;  %v302_v14 = vld [vmem:[#allocation5 + $0x1e8] sm:$0xff]  ;;  %v120_v15 = vld [vmem:[#allocation5 + $0x58] sm:$0xff] }
  0x16   :  { %239 = vmatpush.msra.mxu2 %v236_v5  ;;  %127 = vmatpush.msra.mxu0 %v122_v7  ;;  %v234_v13 = vld [vmem:[#allocation5 + $0x160] sm:$0xff]  ;;  %v183_v16 = vld [vmem:[#allocation5 + $0xd8] sm:$0xff]  ;;  %v119_v19 = vld [vmem:[#allocation5 + $0x50] sm:$0xff] }
  0x17   :  { %190 = vmatpush.msra.mxu1 %v185_v8  ;;  %306 = vmatpush.msra.mxu3 %v303_v10  ;;  %v233_v17 = vld [vmem:[#allocation5 + $0x158] sm:$0xff]  ;;  %v301_v18 = vld [vmem:[#allocation5 + $0x1e0] sm:$0xff]  ;;  %v182_v20 = vld [vmem:[#allocation5 + $0xd0] sm:$0xff] }
  0x18   :  { %240 = vmatpush.msra.mxu2 %v235_v9  ;;  %128 = vmatpush.msra.mxu0 %v121_v11  ;;  %v232_v21 = vld [vmem:[#allocation5 + $0x150] sm:$0xff]  ;;  %v300_v22 = vld [vmem:[#allocation5 + $0x1d8] sm:$0xff]  ;;  %v118_v23 = vld [vmem:[#allocation5 + $0x48] sm:$0xff] }
  0x19   :  { %191 = vmatpush.msra.mxu1 %v184_v12  ;;  %307 = vmatpush.msra.mxu3 %v302_v14  ;;  %v181_v24 = vld [vmem:[#allocation5 + $0xc8] sm:$0xff]  ;;  %v299_v26 = vld [vmem:[#allocation5 + $0x1d0] sm:$0xff]  ;;  %v117_v27 = vld [vmem:[#allocation5 + $0x40] sm:$0xff] }
  0x1a   :  { %241 = vmatpush.msra.mxu2 %v234_v13  ;;  %129 = vmatpush.msra.mxu0 %v120_v15  ;;  %v231_v25 = vld [vmem:[#allocation5 + $0x148] sm:$0xff]  ;;  %v180_v28 = vld [vmem:[#allocation5 + $0xc0] sm:$0xff]  ;;  %v116_v31 = vld [vmem:[#allocation5 + $0x38] sm:$0xff] }
  0x1b   :  { %192 = vmatpush.msra.mxu1 %v183_v16  ;;  %308 = vmatpush.msra.mxu3 %v301_v18  ;;  %v230_v29 = vld [vmem:[#allocation5 + $0x140] sm:$0xff]  ;;  %v298_v30 = vld [vmem:[#allocation5 + $0x1c8] sm:$0xff]  ;;  %v179_v32 = vld [vmem:[#allocation5 + $0xb8] sm:$0xff] }
  0x1c   :  { %242 = vmatpush.msra.mxu2 %v233_v17  ;;  %130 = vmatpush.msra.mxu0 %v119_v19  ;;  %v229_v33 = vld [vmem:[#allocation5 + $0x138] sm:$0xff]  ;;  %v297_v34 = vld [vmem:[#allocation5 + $0x1c0] sm:$0xff]  ;;  %v115_v35 = vld [vmem:[#allocation5 + $0x30] sm:$0xff] }
  0x1d   :  { %193 = vmatpush.msra.mxu1 %v182_v20  ;;  %309 = vmatpush.msra.mxu3 %v300_v22  ;;  %v178_v36 = vld [vmem:[#allocation5 + $0xb0] sm:$0xff]  ;;  %v296_v38 = vld [vmem:[#allocation5 + $0x1b8] sm:$0xff]  ;;  %v114_v39 = vld [vmem:[#allocation5 + $0x28] sm:$0xff] }
  0x1e   :  { %243 = vmatpush.msra.mxu2 %v232_v21  ;;  %131 = vmatpush.msra.mxu0 %v118_v23  ;;  %v228_v37 = vld [vmem:[#allocation5 + $0x130] sm:$0xff]  ;;  %v177_v40 = vld [vmem:[#allocation5 + $0xa8] sm:$0xff]  ;;  %v113_v43 = vld [vmem:[#allocation5 + $0x20] sm:$0xff] }
  0x1f   :  { %194 = vmatpush.msra.mxu1 %v181_v24  ;;  %310 = vmatpush.msra.mxu3 %v299_v26  ;;  %v227_v41 = vld [vmem:[#allocation5 + $0x128] sm:$0xff]  ;;  %v295_v42 = vld [vmem:[#allocation5 + $0x1b0] sm:$0xff]  ;;  %v176_v44 = vld [vmem:[#allocation5 + $0xa0] sm:$0xff] }
  0x20   :  { %244 = vmatpush.msra.mxu2 %v231_v25  ;;  %132 = vmatpush.msra.mxu0 %v117_v27  ;;  %v226_v45 = vld [vmem:[#allocation5 + $0x120] sm:$0xff]  ;;  %v294_v46 = vld [vmem:[#allocation5 + $0x1a8] sm:$0xff]  ;;  %v112_v47 = vld [vmem:[#allocation5 + $0x18] sm:$0xff] }
  0x21   :  { %195 = vmatpush.msra.mxu1 %v180_v28  ;;  %311 = vmatpush.msra.mxu3 %v298_v30  ;;  %v175_v48 = vld [vmem:[#allocation5 + $0x98] sm:$0xff]  ;;  %v293_v50 = vld [vmem:[#allocation5 + $0x1a0] sm:$0xff]  ;;  %v111_v51 = vld [vmem:[#allocation5 + $0x10] sm:$0xff] }
  0x22   :  { %245 = vmatpush.msra.mxu2 %v230_v29  ;;  %133 = vmatpush.msra.mxu0 %v116_v31  ;;  %v225_v49 = vld [vmem:[#allocation5 + $0x118] sm:$0xff]  ;;  %v174_v52 = vld [vmem:[#allocation5 + $0x90] sm:$0xff]  ;;  %v110_v55 = vld [vmem:[#allocation5 + $0x8] sm:$0xff] }
  0x23   :  { %196 = vmatpush.msra.mxu1 %v179_v32  ;;  %312 = vmatpush.msra.mxu3 %v297_v34  ;;  %v224_v53 = vld [vmem:[#allocation5 + $0x110] sm:$0xff]  ;;  %v292_v54 = vld [vmem:[#allocation5 + $0x198] sm:$0xff]  ;;  %v173_v56 = vld [vmem:[#allocation5 + $0x88] sm:$0xff] }
  0x24   :  { %246 = vmatpush.msra.mxu2 %v229_v33  ;;  %134 = vmatpush.msra.mxu0 %v115_v35  ;;  %v223_v57 = vld [vmem:[#allocation5 + $0x108] sm:$0xff]  ;;  %v291_v58 = vld [vmem:[#allocation5 + $0x190] sm:$0xff]  ;;  %v109_v59 = vld [vmem:[#allocation5] sm:$0xff] }
  0x25   :  { %197 = vmatpush.msra.mxu1 %v178_v36  ;;  %313 = vmatpush.msra.mxu3 %v296_v38  ;;  %v172_v60 = vld [vmem:[#allocation5 + $0x80] sm:$0xff]  ;;  %v290_v62 = vld [vmem:[#allocation5 + $0x188] sm:$0xff]  ;;  %v370_v1 = vld [vmem:[#allocation5 + $0x278] sm:$0xff] }
  0x26   :  { %247 = vmatpush.msra.mxu2 %v228_v37  ;;  %135 = vmatpush.msra.mxu0 %v114_v39  ;;  %v222_v61 = vld [vmem:[#allocation5 + $0x100] sm:$0xff]  ;;  %v420_v2 = vld [vmem:[#allocation5 + $0x2f8] sm:$0xff]  ;;  %v369_v5 = vld [vmem:[#allocation5 + $0x270] sm:$0xff] }
  0x27   :  { %198 = vmatpush.msra.mxu1 %v177_v40  ;;  %314 = vmatpush.msra.mxu3 %v295_v42  ;;  %v95_v63 = vld [vmem:[%s1964_s1] sm:$0xff]  ;;  %v486_v3 = vld [vmem:[#allocation5 + $0x378] sm:$0xff]  ;;  %v419_v6 = vld [vmem:[#allocation5 + $0x2f0] sm:$0xff] }
  0x28   :  { %248 = vmatpush.msra.mxu2 %v227_v41  ;;  %136 = vmatpush.msra.mxu0 %v113_v43  ;;  %v289_v0 = vld [vmem:[#allocation5 + $0x180] sm:$0xff]  ;;  %v485_v7 = vld [vmem:[#allocation5 + $0x370] sm:$0xff]  ;;  %v552_v8 = vld [vmem:[#allocation5 + $0x3f8] sm:$0xff] }
  0x29   :  { %199 = vmatpush.msra.mxu1 %v176_v44  ;;  %315 = vmatpush.msra.mxu3 %v294_v46  ;;  %v1532_v4 = vld [vmem:[%s1964_s1 + $0x20] sm:$0xff]  ;;  %v368_v9 = vld [vmem:[#allocation5 + $0x268] sm:$0xff]  ;;  %v551_v12 = vld [vmem:[#allocation5 + $0x3f0] sm:$0xff] }
  0x2a   :  { %249 = vmatpush.msra.mxu2 %v226_v45  ;;  %137 = vmatpush.msra.mxu0 %v112_v47  ;;  %v418_v10 = vld [vmem:[#allocation5 + $0x2e8] sm:$0xff]  ;;  %v367_v13 = vld [vmem:[#allocation5 + $0x260] sm:$0xff]  ;;  %v366_v17 = vld [vmem:[#allocation5 + $0x258] sm:$0xff] }
  0x2b   :  { %200 = vmatpush.msra.mxu1 %v175_v48  ;;  %316 = vmatpush.msra.mxu3 %v293_v50  ;;  %v484_v11 = vld [vmem:[#allocation5 + $0x368] sm:$0xff]  ;;  %v417_v14 = vld [vmem:[#allocation5 + $0x2e0] sm:$0xff]  ;;  %v416_v18 = vld [vmem:[#allocation5 + $0x2d8] sm:$0xff] }
  0x2c   :  { %250 = vmatpush.msra.mxu2 %v225_v49  ;;  %138 = vmatpush.msra.mxu0 %v111_v51  ;;  %v483_v15 = vld [vmem:[#allocation5 + $0x360] sm:$0xff]  ;;  %v96_v16 = vld [vmem:[%s1964_s1 + $0x8] sm:$0xff]  ;;  %v482_v19 = vld [vmem:[#allocation5 + $0x358] sm:$0xff] }
  0x2d   :  { %201 = vmatpush.msra.mxu1 %v174_v52  ;;  %317 = vmatpush.msra.mxu3 %v292_v54  ;;  %v1541_v20 = vld [vmem:[%s1964_s1 + $0x28] sm:$0xff]  ;;  %v365_v22 = vld [vmem:[#allocation5 + $0x250] sm:$0xff]  ;;  %v549_v25 = vld [vmem:[#allocation5 + $0x3e0] sm:$0xff] }
  0x2e   :  { %251 = vmatpush.msra.mxu2 %v224_v53  ;;  %139 = vmatpush.msra.mxu0 %v110_v55  ;;  %v550_v21 = vld [vmem:[#allocation5 + $0x3e8] sm:$0xff]  ;;  %v415_v23 = vld [vmem:[#allocation5 + $0x2d0] sm:$0xff]  ;;  %v548_v29 = vld [vmem:[#allocation5 + $0x3d8] sm:$0xff] }
  0x2f   :  { %202 = vmatpush.msra.mxu1 %v173_v56  ;;  %318 = vmatpush.msra.mxu3 %v291_v58  ;;  %v481_v24 = vld [vmem:[#allocation5 + $0x350] sm:$0xff]  ;;  %v364_v26 = vld [vmem:[#allocation5 + $0x248] sm:$0xff]  ;;  %v363_v30 = vld [vmem:[#allocation5 + $0x240] sm:$0xff] }
  0x30   :  { %252 = vmatpush.msra.mxu2 %v223_v57  ;;  %140 = vmatpush.msra.mxu0 %v109_v59  ;;  %v414_v27 = vld [vmem:[#allocation5 + $0x2c8] sm:$0xff]  ;;  %v413_v31 = vld [vmem:[#allocation5 + $0x2c0] sm:$0xff]  ;;  %v97_v33 = vld [vmem:[%s1964_s1 + $0x10] sm:$0xff] }
  0x31   :  { %203 = vmatpush.msra.mxu1 %v172_v60  ;;  %319 = vmatpush.msra.mxu3 %v290_v62  ;;  %v480_v28 = vld [vmem:[#allocation5 + $0x348] sm:$0xff]  ;;  %v479_v32 = vld [vmem:[#allocation5 + $0x340] sm:$0xff]  ;;  %v547_v34 = vld [vmem:[#allocation5 + $0x3d0] sm:$0xff] }
  0x32   :  { %253 = vmatpush.msra.mxu2 %v222_v61  ;;  %141 = vmatmul.f32.vlgmr.msra.gmra.mxu0 %v95_v63  ;;  %v362_v35 = vld [vmem:[#allocation5 + $0x238] sm:$0xff]  ;;  %v1550_v38 = vld [vmem:[%s1964_s1 + $0x30] sm:$0xff]  ;;  %v546_v39 = vld [vmem:[#allocation5 + $0x3c8] sm:$0xff] }
  0x33   :  { %204 = vmatmul.f32.vlgmr.msra.gmra.mxu1 %v95_v63  ;;  %254 = vmatmul.f32.vlgmr.msra.gmra.mxu2 %v95_v63  ;;  %v412_v36 = vld [vmem:[#allocation5 + $0x2b8] sm:$0xff]  ;;  %v361_v40 = vld [vmem:[#allocation5 + $0x230] sm:$0xff]  ;;  %v545_v43 = vld [vmem:[#allocation5 + $0x3c0] sm:$0xff] }
  0x34   :  { %320 = vmatpush.msra.mxu3 %v289_v0  ;;  %371 = vmatpush.msrb.mxu0 %v370_v1  ;;  %v478_v37 = vld [vmem:[#allocation5 + $0x338] sm:$0xff]  ;;  %v411_v41 = vld [vmem:[#allocation5 + $0x2b0] sm:$0xff]  ;;  %v360_v44 = vld [vmem:[#allocation5 + $0x228] sm:$0xff] }
  0x35   :  { %421 = vmatpush.msrb.mxu1 %v420_v2  ;;  %487 = vmatpush.msrb.mxu2 %v486_v3  ;;  %v477_v42 = vld [vmem:[#allocation5 + $0x330] sm:$0xff]  ;;  %v410_v45 = vld [vmem:[#allocation5 + $0x2a8] sm:$0xff]  ;;  %v544_v47 = vld [vmem:[#allocation5 + $0x3b8] sm:$0xff] }
  0x36   :  { %321 = vmatmul.f32.vlgmr.msra.gmra.mxu3 %v1532_v4  ;;  %372 = vmatpush.msrb.mxu0 %v369_v5  ;;  %v476_v46 = vld [vmem:[#allocation5 + $0x328] sm:$0xff]  ;;  %v359_v48 = vld [vmem:[#allocation5 + $0x220] sm:$0xff]  ;;  %v98_v51 = vld [vmem:[%s1964_s1 + $0x18] sm:$0xff] }
  0x37   :  { %422 = vmatpush.msrb.mxu1 %v419_v6  ;;  %488 = vmatpush.msrb.mxu2 %v485_v7  ;;  %v409_v49 = vld [vmem:[#allocation5 + $0x2a0] sm:$0xff]  ;;  %v543_v52 = vld [vmem:[#allocation5 + $0x3b0] sm:$0xff]  ;;  %v358_v53 = vld [vmem:[#allocation5 + $0x218] sm:$0xff] }
  0x38   :  { %553 = vmatpush.msrb.mxu3 %v552_v8  ;;  %373 = vmatpush.msrb.mxu0 %v368_v9  ;;  %v475_v50 = vld [vmem:[#allocation5 + $0x320] sm:$0xff]  ;;  %v408_v54 = vld [vmem:[#allocation5 + $0x298] sm:$0xff]  ;;  %v542_v57 = vld [vmem:[#allocation5 + $0x3a8] sm:$0xff] }
  0x39   :  { %423 = vmatpush.msrb.mxu1 %v418_v10  ;;  %489 = vmatpush.msrb.mxu2 %v484_v11  ;;  %v474_v55 = vld [vmem:[#allocation5 + $0x318] sm:$0xff]  ;;  %v357_v58 = vld [vmem:[#allocation5 + $0x210] sm:$0xff]  ;;  %v541_v61 = vld [vmem:[#allocation5 + $0x3a0] sm:$0xff] }
  0x3a   :  { %554 = vmatpush.msrb.mxu3 %v551_v12  ;;  %374 = vmatpush.msrb.mxu0 %v367_v13  ;;  %v1559_v56 = vld [vmem:[%s1964_s1 + $0x38] sm:$0xff]  ;;  %v407_v59 = vld [vmem:[#allocation5 + $0x290] sm:$0xff]  ;;  %v356_v62 = vld [vmem:[#allocation5 + $0x208] sm:$0xff] }
  0x3b   :  { %424 = vmatpush.msrb.mxu1 %v417_v14  ;;  %490 = vmatpush.msrb.mxu2 %v483_v15  ;;  %v473_v60 = vld [vmem:[#allocation5 + $0x310] sm:$0xff]  ;;  %v406_v63 = vld [vmem:[#allocation5 + $0x288] sm:$0xff]  ;;  %v540_v1 = vld [vmem:[#allocation5 + $0x398] sm:$0xff] }
  0x3c   :  { %144 = vmatmul.f32.gmra.mxu0 %v96_v16  ;;  %207 = vmatmul.f32.gmra.mxu1 %v96_v16  ;;  %v472_v0 = vld [vmem:[#allocation5 + $0x308] sm:$0xff]  ;;  %v355_v2 = vld [vmem:[#allocation5 + $0x200] sm:$0xff]  ;;  %v539_v7 = vld [vmem:[#allocation5 + $0x390] sm:$0xff] }
  0x3d   :  { %257 = vmatmul.f32.gmra.mxu2 %v96_v16  ;;  %375 = vmatpush.msrb.mxu0 %v366_v17  ;;  %v405_v3 = vld [vmem:[#allocation5 + $0x280] sm:$0xff]  ;;  %v602_v8 = vld [vmem:[#allocation5 + $0x478] sm:$0xff]  ;;  %v538_v9 = vld [vmem:[#allocation5 + $0x388] sm:$0xff] }
  0x3e   :  { %425 = vmatpush.msrb.mxu1 %v416_v18  ;;  %491 = vmatpush.msrb.mxu2 %v482_v19  ;;  %v471_v5 = vld [vmem:[#allocation5 + $0x300] sm:$0xff]  ;;  %v601_v10 = vld [vmem:[#allocation5 + $0x470] sm:$0xff]  ;;  %v600_v12 = vld [vmem:[#allocation5 + $0x468] sm:$0xff] }
  0x3f   :  { %324 = vmatmul.f32.gmra.mxu3 %v1541_v20  ;;  %376 = vmatpush.msrb.mxu0 %v365_v22  ;;  %v1321_v6 = vld [vmem:[%s1964_s1 + $0x40] sm:$0xff]  ;;  %v1322_v14 = vld [vmem:[%s1964_s1 + $0x48] sm:$0xff]  ;;  %v598_v15 = vld [vmem:[#allocation5 + $0x458] sm:$0xff] }
  0x40   :  { %555 = vmatpush.msrb.mxu3 %v550_v21  ;;  %426 = vmatpush.msrb.mxu1 %v415_v23  ;;  %v537_v11 = vld [vmem:[#allocation5 + $0x380] sm:$0xff]  ;;  %v596_v16 = vld [vmem:[#allocation5 + $0x448] sm:$0xff]  ;;  %v1323_v18 = vld [vmem:[%s1964_s1 + $0x50] sm:$0xff] }
  0x41   :  { %492 = vmatpush.msrb.mxu2 %v481_v24  ;;  %377 = vmatpush.msrb.mxu0 %v364_v26  ;;  %v599_v13 = vld [vmem:[#allocation5 + $0x460] sm:$0xff]  ;;  %v594_v19 = vld [vmem:[#allocation5 + $0x438] sm:$0xff]  ;;  %v592_v21 = vld [vmem:[#allocation5 + $0x428] sm:$0xff] }
  0x42   :  { %556 = vmatpush.msrb.mxu3 %v549_v25  ;;  %427 = vmatpush.msrb.mxu1 %v414_v27  ;;  %v595_v17 = vld [vmem:[#allocation5 + $0x440] sm:$0xff]  ;;  %v1324_v23 = vld [vmem:[%s1964_s1 + $0x58] sm:$0xff]  ;;  %v589_v25 = vld [vmem:[#allocation5 + $0x410] sm:$0xff]  ;;  %s652_s1 = sld [smem:[#allocation2]] }
  0x43   :  { %493 = vmatpush.msrb.mxu2 %v480_v28  ;;  %378 = vmatpush.msrb.mxu0 %v363_v30  ;;  %v591_v22 = vld [vmem:[#allocation5 + $0x420] sm:$0xff]  ;;  %v590_v24 = vld [vmem:[#allocation5 + $0x418] sm:$0xff]  ;;  %v588_v26 = vld [vmem:[#allocation5 + $0x408] sm:$0xff] }
  0x44   :  { %557 = vmatpush.msrb.mxu3 %v548_v29  ;;  %428 = vmatpush.msrb.mxu1 %v413_v31  ;;  %v587_v27 = vld [vmem:[#allocation5 + $0x400] sm:$0xff] }
  0x45   :  { %494 = vmatpush.msrb.mxu2 %v479_v32  ;;  %147 = vmatmul.f32.gmra.mxu0 %v97_v33 }
  0x46   :  { %210 = vmatmul.f32.gmra.mxu1 %v97_v33  ;;  %260 = vmatmul.f32.gmra.mxu2 %v97_v33 }
  0x47   :  { %558 = vmatpush.msrb.mxu3 %v547_v34  ;;  %379 = vmatpush.msrb.mxu0 %v362_v35  ;;  %v677_v34 = vld [vmem:[#allocation6 + $0x78] sm:$0xff] }
  0x48   :  { %429 = vmatpush.msrb.mxu1 %v412_v36  ;;  %495 = vmatpush.msrb.mxu2 %v478_v37  ;;  %v739_v35 = vld [vmem:[#allocation6 + $0xf8] sm:$0xff] }
  0x49   :  { %327 = vmatmul.f32.gmra.mxu3 %v1550_v38  ;;  %380 = vmatpush.msrb.mxu0 %v361_v40  ;;  %v789_v36 = vld [vmem:[#allocation6 + $0x178] sm:$0xff]  ;;  %v788_v40 = vld [vmem:[#allocation6 + $0x170] sm:$0xff] }
  0x4a   :  { %559 = vmatpush.msrb.mxu3 %v546_v39  ;;  %430 = vmatpush.msrb.mxu1 %v411_v41  ;;  %v738_v39 = vld [vmem:[#allocation6 + $0xf0] sm:$0xff] }
  0x4b   :  { %496 = vmatpush.msrb.mxu2 %v477_v42  ;;  %381 = vmatpush.msrb.mxu0 %v360_v44  ;;  %v737_v44 = vld [vmem:[#allocation6 + $0xe8] sm:$0xff] }
  0x4c   :  { %560 = vmatpush.msrb.mxu3 %v545_v43  ;;  %431 = vmatpush.msrb.mxu1 %v410_v45  ;;  %v675_v43 = vld [vmem:[#allocation6 + $0x68] sm:$0xff] }
  0x4d   :  { %497 = vmatpush.msrb.mxu2 %v476_v46  ;;  %382 = vmatpush.msrb.mxu0 %v359_v48  ;;  %v787_v45 = vld [vmem:[#allocation6 + $0x168] sm:$0xff]  ;;  %v736_v48 = vld [vmem:[#allocation6 + $0xe0] sm:$0xff] }
  0x4e   :  { %561 = vmatpush.msrb.mxu3 %v544_v47  ;;  %432 = vmatpush.msrb.mxu1 %v409_v49  ;;  %v674_v47 = vld [vmem:[#allocation6 + $0x60] sm:$0xff] }
  0x4f   :  { %498 = vmatpush.msrb.mxu2 %v475_v50  ;;  %150 = vmatmul.f32.gmra.mxu0 %v98_v51  ;;  %v786_v49 = vld [vmem:[#allocation6 + $0x160] sm:$0xff]  ;;  %v673_v50 = vld [vmem:[#allocation6 + $0x58] sm:$0xff] }
  0x50   :  { %213 = vmatmul.f32.gmra.mxu1 %v98_v51  ;;  %263 = vmatmul.f32.gmra.mxu2 %v98_v51  ;;  %v735_v51 = vld [vmem:[#allocation6 + $0xd8] sm:$0xff] }
  0x51   :  { %562 = vmatpush.msrb.mxu3 %v543_v52  ;;  %383 = vmatpush.msrb.mxu0 %v358_v53  ;;  %v785_v52 = vld [vmem:[#allocation6 + $0x158] sm:$0xff]  ;;  %v672_v53 = vld [vmem:[#allocation6 + $0x50] sm:$0xff] }
  0x52   :  { %433 = vmatpush.msrb.mxu1 %v408_v54  ;;  %499 = vmatpush.msrb.mxu2 %v474_v55  ;;  %v734_v54 = vld [vmem:[#allocation6 + $0xd0] sm:$0xff] }
  0x53   :  { %330 = vmatmul.f32.gmra.mxu3 %v1559_v56  ;;  %384 = vmatpush.msrb.mxu0 %v357_v58  ;;  %v784_v55 = vld [vmem:[#allocation6 + $0x150] sm:$0xff]  ;;  %v733_v58 = vld [vmem:[#allocation6 + $0xc8] sm:$0xff] }
  0x54   :  { %563 = vmatpush.msrb.mxu3 %v542_v57  ;;  %434 = vmatpush.msrb.mxu1 %v407_v59  ;;  %v671_v57 = vld [vmem:[#allocation6 + $0x48] sm:$0xff] }
  0x55   :  { %500 = vmatpush.msrb.mxu2 %v473_v60  ;;  %385 = vmatpush.msrb.mxu0 %v356_v62  ;;  %v783_v59 = vld [vmem:[#allocation6 + $0x148] sm:$0xff]  ;;  %v670_v62 = vld [vmem:[#allocation6 + $0x40] sm:$0xff] }
  0x56   :  { %564 = vmatpush.msrb.mxu3 %v541_v61  ;;  %435 = vmatpush.msrb.mxu1 %v406_v63  ;;  %v732_v63 = vld [vmem:[#allocation6 + $0xc0] sm:$0xff] }
  0x57   :  { %501 = vmatpush.msrb.mxu2 %v472_v0  ;;  %386 = vmatpush.msrb.mxu0 %v355_v2  ;;  %v782_v0 = vld [vmem:[#allocation6 + $0x140] sm:$0xff]  ;;  %v669_v2 = vld [vmem:[#allocation6 + $0x38] sm:$0xff] }
  0x58   :  { %565 = vmatpush.msrb.mxu3 %v540_v1  ;;  %436 = vmatpush.msrb.mxu1 %v405_v3  ;;  %v731_v3 = vld [vmem:[#allocation6 + $0xb8] sm:$0xff] }
  0x59   :  { %502 = vmatpush.msrb.mxu2 %v471_v5  ;;  %387 = vmatmul.f32.vlgmr.msrb.gmra.mxu0 %v1532_v4  ;;  %v781_v5 = vld [vmem:[#allocation6 + $0x138] sm:$0xff] }
  0x5a   :  { %437 = vmatmul.f32.vlgmr.msrb.gmra.mxu1 %v1532_v4  ;;  %503 = vmatmul.f32.vlgmr.msrb.gmra.mxu2 %v1321_v6  ;;  %v597_v4 = vld [vmem:[#allocation5 + $0x450] sm:$0xff] }
  0x5b   :  { %566 = vmatpush.msrb.mxu3 %v539_v7  ;;  %603 = vmatpush.msra.mxu0 %v602_v8  ;;  %v730_v7 = vld [vmem:[#allocation6 + $0xb0] sm:$0xff] }
  0x5c   :  { %678 = vmatpush.msra.mxu1 %v677_v34  ;;  %740 = vmatpush.msra.mxu2 %v739_v35  ;;  %v780_v8 = vld [vmem:[#allocation6 + $0x130] sm:$0xff]  ;;  %v662_v34 = vld [vmem:[#allocation6] sm:$0xff] }
  0x5d   :  { %567 = vmatpush.msrb.mxu3 %v538_v9  ;;  %604 = vmatpush.msra.mxu0 %v601_v10  ;;  %v667_v9 = vld [vmem:[#allocation6 + $0x28] sm:$0xff]  ;;  %v724_v35 = vld [vmem:[#allocation6 + $0x80] sm:$0xff] }
  0x5e   :  { %741 = vmatpush.msra.mxu2 %v738_v39  ;;  %v729_v10 = vld [vmem:[#allocation6 + $0xa8] sm:$0xff] }
  0x5f   :  { %568 = vmatpush.msrb.mxu3 %v537_v11  ;;  %605 = vmatpush.msra.mxu0 %v600_v12  ;;  %v779_v11 = vld [vmem:[#allocation6 + $0x128] sm:$0xff] }
  0x60   :  { %569 = vmatmul.f32.vlgmr.msrb.gmra.mxu3 %v1321_v6  ;;  %742 = vmatpush.msra.mxu2 %v737_v44 }
  0x61   :  { %606 = vmatpush.msra.mxu0 %v599_v13  ;;  %790 = vmatpush.msra.mxu3 %v789_v36  ;;  %v774_v36 = vld [vmem:[#allocation6 + $0x100] sm:$0xff] }
  0x62   :  { %440 = vmatmul.f32.gmra.mxu1 %v1541_v20  ;;  %390 = vmatmul.f32.gmra.mxu0 %v1541_v20  ;;  %v593_v20 = vld [vmem:[#allocation5 + $0x430] sm:$0xff] }
  0x63   :  { %506 = vmatmul.f32.gmra.mxu2 %v1322_v14  ;;  %607 = vmatpush.msra.mxu0 %v598_v15  ;;  %v728_v15 = vld [vmem:[#allocation6 + $0xa0] sm:$0xff] }
  0x64   :  { %791 = vmatpush.msra.mxu3 %v788_v40  ;;  %743 = vmatpush.msra.mxu2 %v736_v48 }
  0x65   :  { %608 = vmatpush.msra.mxu0 %v597_v4  ;;  %v778_v4 = vld [vmem:[#allocation6 + $0x120] sm:$0xff] }
  0x66   :  { %792 = vmatpush.msra.mxu3 %v787_v45  ;;  %744 = vmatpush.msra.mxu2 %v735_v51 }
  0x67   :  { %609 = vmatpush.msra.mxu0 %v596_v16 }
  0x68   :  { %572 = vmatmul.f32.gmra.mxu3 %v1322_v14  ;;  %745 = vmatpush.msra.mxu2 %v734_v54 }
  0x69   :  { %610 = vmatpush.msra.mxu0 %v595_v17  ;;  %793 = vmatpush.msra.mxu3 %v786_v49  ;;  %v665_v17 = vld [vmem:[#allocation6 + $0x18] sm:$0xff] }
  0x6a   :  { %443 = vmatmul.f32.gmra.mxu1 %v1550_v38  ;;  %393 = vmatmul.f32.gmra.mxu0 %v1550_v38  ;;  %v676_v38 = vld [vmem:[#allocation6 + $0x70] sm:$0xff] }
  0x6b   :  { %509 = vmatmul.f32.gmra.mxu2 %v1323_v18  ;;  %611 = vmatpush.msra.mxu0 %v594_v19  ;;  %v777_v19 = vld [vmem:[#allocation6 + $0x118] sm:$0xff] }
  0x6c   :  { %679 = vmatpush.msra.mxu1 %v676_v38  ;;  %794 = vmatpush.msra.mxu3 %v785_v52 }
  0x6d   :  { %612 = vmatpush.msra.mxu0 %v593_v20  ;;  %746 = vmatpush.msra.mxu2 %v733_v58 }
  0x6e   :  { %680 = vmatpush.msra.mxu1 %v675_v43  ;;  %795 = vmatpush.msra.mxu3 %v784_v55 }
  0x6f   :  { %613 = vmatpush.msra.mxu0 %v592_v21  ;;  %747 = vmatpush.msra.mxu2 %v732_v63  ;;  %v664_v21 = vld [vmem:[#allocation6 + $0x10] sm:$0xff] }
  0x70   :  { %575 = vmatmul.f32.gmra.mxu3 %v1323_v18  ;;  %681 = vmatpush.msra.mxu1 %v674_v47 }
  0x71   :  { %614 = vmatpush.msra.mxu0 %v591_v22  ;;  %796 = vmatpush.msra.mxu3 %v783_v59  ;;  %v726_v22 = vld [vmem:[#allocation6 + $0x90] sm:$0xff] }
  0x72   :  { %446 = vmatmul.f32.gmra.mxu1 %v1559_v56  ;;  %396 = vmatmul.f32.gmra.mxu0 %v1559_v56 }
  0x73   :  { %512 = vmatmul.f32.gmra.mxu2 %v1324_v23  ;;  %615 = vmatpush.msra.mxu0 %v590_v24  ;;  %v663_v24 = vld [vmem:[#allocation6 + $0x8] sm:$0xff] }
  0x74   :  { %682 = vmatpush.msra.mxu1 %v673_v50  ;;  %797 = vmatpush.msra.mxu3 %v782_v0 }
  0x75   :  { %616 = vmatpush.msra.mxu0 %v589_v25  ;;  %748 = vmatpush.msra.mxu2 %v731_v3  ;;  %v725_v25 = vld [vmem:[#allocation6 + $0x88] sm:$0xff] }
  0x76   :  { %683 = vmatpush.msra.mxu1 %v672_v53  ;;  %798 = vmatpush.msra.mxu3 %v781_v5 }
  0x77   :  { %617 = vmatpush.msra.mxu0 %v588_v26  ;;  %749 = vmatpush.msra.mxu2 %v730_v7  ;;  %v775_v26 = vld [vmem:[#allocation6 + $0x108] sm:$0xff] }
  0x78   :  { %578 = vmatmul.f32.gmra.mxu3 %v1324_v23  ;;  %684 = vmatpush.msra.mxu1 %v671_v57 }
  0x79   :  { %618 = vmatpush.msra.mxu0 %v587_v27  ;;  %799 = vmatpush.msra.mxu3 %v780_v8 }
  0x7a   :  { %619 = vmatmul.f32.vlgmr.msra.gmra.mxu0 %v1321_v6  ;;  %685 = vmatpush.msra.mxu1 %v670_v62  ;;  %v668_v6 = vld [vmem:[#allocation6 + $0x30] sm:$0xff] }
  0x7b   :  { %750 = vmatpush.msra.mxu2 %v729_v10  ;;  %800 = vmatpush.msra.mxu3 %v779_v11 }
  0x7c   :  { %686 = vmatpush.msra.mxu1 %v669_v2 }
  0x7d   :  { %751 = vmatpush.msra.mxu2 %v728_v15  ;;  %801 = vmatpush.msra.mxu3 %v778_v4 }
  0x7e   :  { %687 = vmatpush.msra.mxu1 %v668_v6 }
  0x7f   :  { %802 = vmatpush.msra.mxu3 %v777_v19 }
  0x80   :  { %688 = vmatpush.msra.mxu1 %v667_v9 }
  0x82   :  { %622 = vmatmul.f32.gmra.mxu0 %v1322_v14  ;;  %v666_v14 = vld [vmem:[#allocation6 + $0x20] sm:$0xff] }
  0x83   :  { %689 = vmatpush.msra.mxu1 %v666_v14 }
  0x85   :  { %690 = vmatpush.msra.mxu1 %v665_v17 }
  0x87   :  { %691 = vmatpush.msra.mxu1 %v664_v21 }
  0x89   :  { %692 = vmatpush.msra.mxu1 %v663_v24 }
  0x8a   :  { %625 = vmatmul.f32.gmra.mxu0 %v1323_v18  ;;  %v727_v18 = vld [vmem:[#allocation6 + $0x98] sm:$0xff] }
  0x8b   :  { %752 = vmatpush.msra.mxu2 %v727_v18  ;;  %693 = vmatpush.msra.mxu1 %v662_v34 }
  0x8d   :  { %753 = vmatpush.msra.mxu2 %v726_v22 }
  0x8f   :  { %754 = vmatpush.msra.mxu2 %v725_v25 }
  0x91   :  { %755 = vmatpush.msra.mxu2 %v724_v35 }
  0x92   :  { %628 = vmatmul.f32.gmra.mxu0 %v1324_v23  ;;  %v776_v23 = vld [vmem:[#allocation6 + $0x110] sm:$0xff] }
  0x93   :  { %803 = vmatpush.msra.mxu3 %v776_v23 }
  0x95   :  { %804 = vmatpush.msra.mxu3 %v775_v26 }
  0x97   :  { %805 = vmatpush.msra.mxu3 %v774_v36 }
  0xaf   :  { %v1582_v28 = vpop.f32.mrf.mxu0 }
  0xb0   :  { %v1586_v30 = vpop.f32.mrf.mxu1  ;;  %v159_v38 = vrot.slane %v1582_v28, 7 }
  0xb2   :  { %v170_v45 = vsel %vm158_vm0, 0.0, %v159_v38 }
  0xb3   :  { %v217_v49 = vadd.f32 %v1586_v30, %v170_v45  ;;  %v879_v45 = vld [vmem:[%s1968_s5 + $0x70] sm:$0xff] }
  0xb6   :  { %v1588_v31 = vpop.f32.mrf.mxu2 }
  0xb7   :  { %v272_v40 = vrot.slane %v1588_v31, 1 }
  0xb9   :  { %v1584_v29 = vpop.f32.mrf.mxu0  ;;  %v1592_v33 = vpop.f32.mrf.mxu1 }
  0xba   :  { %v1600_v46 = vpop.f32.mrf.mxu3  ;;  %v160_v51 = vrot.slane %v1584_v29, 7 }
  0xbb   :  { %v338_v48 = vrot.slane %v1600_v46, 7 }
  0xbc   :  { %v161_v57 = vsel %vm158_vm0, %v159_v38, %v160_v51 }
  0xbd   :  { %v349_v31 = vsel %vm158_vm0, 0.0, %v338_v48 }
  0xc0   :  { %v1594_v37 = vpop.f32.mrf.mxu2 }
  0xc1   :  { %v273_v43 = vrot.slane %v1594_v37, 1 }
  0xc2   :  { %v1590_v32 = vpop.f32.mrf.mxu0  ;;  %v1608_v1 = vpop.f32.mrf.mxu3 }
  0xc3   :  { %v1598_v42 = vpop.f32.mrf.mxu1  ;;  %v274_v28 = vsel %vm271_vm1, %v272_v40, %v273_v43  ;;  %v339_v30 = vrot.slane %v1608_v1, 7  ;;  %v162_v3 = vrot.slane %v1590_v32, 7  ;;  %v880_v40 = vld [vmem:[%s1968_s5 + $0x78] sm:$0xff] }
  0xc4   :  { %v284_v52 = vadd.f32 %v274_v28, %v217_v49  ;;  %914 = vmatpush.msrb.mxu1 %v880_v40  ;;  %v878_v28 = vld [vmem:[%s1968_s5 + $0x68] sm:$0xff]  ;;  %v869_v40 = vld [vmem:[%s1968_s5 + $0x20] sm:$0xff] }
  0xc5   :  { %v340_v9 = vsel %vm158_vm0, %v338_v48, %v339_v30  ;;  %v862_v48 = vld [vmem:[%s1967_s4 + $0x68] sm:$0xff] }
  0xc6   :  { %v350_v58 = vadd.f32 %v349_v31, %v284_v52  ;;  %915 = vmatpush.msrb.mxu1 %v879_v45  ;;  %v851_v45 = vld [vmem:[%s1967_s4 + $0x10] sm:$0xff] }
  0xc8   :  { %916 = vmatpush.msrb.mxu1 %v878_v28  ;;  %v866_v28 = vld [vmem:[%s1968_s5 + $0x8] sm:$0xff] }
  0xc9   :  { %v1602_v56 = vpop.f32.mrf.mxu2 }
  0xca   :  { %v275_v37 = vrot.slane %v1602_v56, 1  ;;  %v218_v56 = vadd.f32 %v1592_v33, %v161_v57 }
  0xcc   :  { %v1596_v41 = vpop.f32.mrf.mxu0  ;;  %v1614_v20 = vpop.f32.mrf.mxu3  ;;  %v276_v62 = vsel %vm271_vm1, %v273_v43, %v275_v37  ;;  %v863_v43 = vld [vmem:[%s1967_s4 + $0x70] sm:$0xff] }
  0xcd   :  { %v1606_v61 = vpop.f32.mrf.mxu1  ;;  %v164_v5 = vrot.slane %v1596_v41, 7  ;;  %v285_v6 = vadd.f32 %v276_v62, %v218_v56  ;;  %v341_v33 = vrot.slane %v1614_v20, 7  ;;  %v877_v62 = vld [vmem:[%s1968_s5 + $0x60] sm:$0xff] }
  0xce   :  { %917 = vmatpush.msrb.mxu1 %v877_v62 }
  0xcf   :  { %v165_v11 = vsel %vm158_vm0, %v162_v3, %v164_v5  ;;  %v351_v32 = vadd.f32 %v340_v9, %v285_v6  ;;  %v342_v19 = vsel %vm158_vm0, %v339_v30, %v341_v33 }
  0xd0   :  { %v220_v22 = vadd.f32 %v1606_v61, %v165_v11  ;;  %v864_v61 = vld [vmem:[%s1967_s4 + $0x78] sm:$0xff] }
  0xd1   :  { %885 = vmatpush.msrb.mxu0 %v864_v61  ;;  %v853_v61 = vld [vmem:[%s1967_s4 + $0x20] sm:$0xff] }
  0xd3   :  { %v1610_v12 = vpop.f32.mrf.mxu2  ;;  %886 = vmatpush.msrb.mxu0 %v863_v43  ;;  %v852_v43 = vld [vmem:[%s1967_s4 + $0x18] sm:$0xff] }
  0xd4   :  { %v277_v8 = vrot.slane %v1610_v12, 1 }
  0xd5   :  { %887 = vmatpush.msrb.mxu0 %v862_v48  ;;  %v850_v48 = vld [vmem:[%s1967_s4 + $0x8] sm:$0xff] }
  0xd6   :  { %v1604_v60 = vpop.f32.mrf.mxu0  ;;  %v1624_v47 = vpop.f32.mrf.mxu3  ;;  %v278_v15 = vsel %vm271_vm1, %v275_v37, %v277_v8  ;;  %v283_v23 = vsel %vm271_vm1, %v277_v8, 0.0 }
  0xd7   :  { %v438_v16 = vpop.f32.mrf.mxu1  ;;  %v400_v0 = vadd.f32 %v1604_v60, %v350_v58  ;;  %v163_v60 = vsel %vm158_vm0, %v160_v51, %v162_v3  ;;  %v343_v26 = vrot.slane %v1624_v47, 7  ;;  %v287_v47 = vadd.f32 %v283_v23, %v220_v22  ;;  %v861_v58 = vld [vmem:[%s1967_s4 + $0x60] sm:$0xff]  ;;  %v859_v22 = vld [vmem:[%s1967_s4 + $0x50] sm:$0xff] }
  0xd8   :  { %v454_v53 = vrot.slane %v438_v16, 1  ;;  %v219_v17 = vadd.f32 %v1598_v42, %v163_v60  ;;  %888 = vmatpush.msrb.mxu0 %v861_v58  ;;  %v875_v23 = vld [vmem:[%s1968_s5 + $0x50] sm:$0xff] }
  0xd9   :  { %v344_v37 = vsel %vm158_vm0, %v341_v33, %v343_v26  ;;  %v857_v26 = vld [vmem:[%s1967_s4 + $0x40] sm:$0xff] }
  0xda   :  { %v286_v35 = vadd.f32 %v278_v15, %v219_v17 }
  0xdc   :  { %v352_v49 = vadd.f32 %v342_v19, %v286_v35  ;;  %v856_v35 = vld [vmem:[%s1967_s4 + $0x38] sm:$0xff] }
  0xdd   :  { %v1619_v39 = vpop.f32.mrf.mxu2 }
  0xde   :  { %v520_v29 = vrot.slane %v1619_v39, 7  ;;  %v1667_v39 = vstv %s652_s1 }
  0xdf   :  { %v1612_v13 = vpop.f32.mrf.mxu0  ;;  %v441_v44 = vpop.f32.mrf.mxu1 }
  0xe0   :  { %v455_v54 = vrot.slane %v441_v44, 1  ;;  %v531_v1 = vsel %vm158_vm0, 0.0, %v520_v29  ;;  %v401_v18 = vadd.f32 %v1612_v13, %v351_v32 }
  0xe2   :  { %v456_v63 = vsel %vm271_vm1, %v454_v53, %v455_v54 }
  0xe3   :  { %v570_v46 = vpop.f32.mrf.mxu3  ;;  %v466_v7 = vadd.f32 %v456_v63, %v400_v0  ;;  %v353_v63 = vadd.f32 %v344_v37, %v287_v47  ;;  %v867_v47 = vld [vmem:[%s1968_s5 + $0x10] sm:$0xff] }
  0xe5   :  { %v532_v14 = vadd.f32 %v531_v1, %v466_v7 }
  0xe6   :  { %v1634_v55 = vpop.f32.mrf.mxu2 }
  0xe7   :  { %v1616_v27 = vpop.f32.mrf.mxu0  ;;  %v1637_v59 = vpop.f32.mrf.mxu1  ;;  %v521_v12 = vrot.slane %v1634_v55, 7  ;;  %v582_v34 = vadd.f32 %v570_v46, %v532_v14 }
  0xe8   :  { %v457_v10 = vrot.slane %v1637_v59, 1 }
  0xe9   :  { %v522_v38 = vsel %vm158_vm0, %v520_v29, %v521_v12 }
  0xea   :  { %v458_v4 = vsel %vm271_vm1, %v455_v54, %v457_v10  ;;  %v402_v54 = vadd.f32 %v1616_v27, %v352_v49  ;;  %v849_v49 = vld [vmem:[%s1967_s4] sm:$0xff] }
  0xeb   :  { %v573_v16 = vpop.f32.mrf.mxu3  ;;  %v467_v36 = vadd.f32 %v458_v4, %v401_v18 }
  0xed   :  { %v533_v51 = vadd.f32 %v522_v38, %v467_v36  ;;  %v872_v36 = vld [vmem:[%s1968_s5 + $0x38] sm:$0xff]  ;;  %v855_v38 = vld [vmem:[%s1967_s4 + $0x30] sm:$0xff] }
  0xee   :  { %v1654_v41 = vpop.f32.mrf.mxu2 }
  0xef   :  { %v1629_v50 = vpop.f32.mrf.mxu0  ;;  %v447_v20 = vpop.f32.mrf.mxu1  ;;  %v523_v31 = vrot.slane %v1654_v41, 7  ;;  %v583_v29 = vadd.f32 %v573_v16, %v533_v51  ;;  %v865_v51 = vld [vmem:[%s1968_s5] sm:$0xff] }
  0xf0   :  { %v459_v42 = vrot.slane %v447_v20, 1  ;;  %v403_v3 = vadd.f32 %v1629_v50, %v353_v63  ;;  %v860_v20 = vld [vmem:[%s1967_s4 + $0x58] sm:$0xff]  ;;  %v840_v63 = vstv %s1325_s29 }
  0xf1   :  { %v524_v27 = vsel %vm158_vm0, %v521_v12, %v523_v31  ;;  %889 = vmatpush.msrb.mxu0 %v860_v20 }
  0xf2   :  { %v460_v53 = vsel %vm271_vm1, %v457_v10, %v459_v42  ;;  %v465_v6 = vsel %vm271_vm1, %v459_v42, 0.0  ;;  %v871_v42 = vld [vmem:[%s1968_s5 + $0x30] sm:$0xff] }
  0xf3   :  { %v576_v59 = vpop.f32.mrf.mxu3  ;;  %v468_v56 = vadd.f32 %v460_v53, %v402_v54  ;;  %v469_v9 = vadd.f32 %v465_v6, %v403_v3  ;;  %890 = vmatpush.msrb.mxu0 %v859_v22 }
  0xf5   :  { %v534_v7 = vadd.f32 %v524_v27, %v468_v56 }
  0xf6   :  { %v513_v55 = vpop.f32.mrf.mxu2 }
  0xf7   :  { %v620_v2 = vpop.f32.mrf.mxu0  ;;  %v525_v0 = vrot.slane %v513_v55, 7  ;;  %v584_v11 = vadd.f32 %v576_v59, %v534_v7 }
  0xf8   :  { %v636_v24 = vrot.slane %v620_v2, 1 }
  0xf9   :  { %v526_v1 = vsel %vm158_vm0, %v523_v31, %v525_v0 }
  0xfa   :  { %v535_v32 = vadd.f32 %v526_v1, %v469_v9 }
  0xfb   :  { %v579_v14 = vpop.f32.mrf.mxu3 }
  0xfc   :  { %v585_v12 = vadd.f32 %v579_v14, %v535_v32 }
  0xff   :  { %v623_v21 = vpop.f32.mrf.mxu0 }
 0x100   :  { %v637_v25 = vrot.slane %v623_v21, 1  ;;  %v876_v21 = vld [vmem:[%s1968_s5 + $0x58] sm:$0xff] }
 0x101   :  { %918 = vmatpush.msrb.mxu1 %v876_v21 }
 0x102   :  { %v638_v13 = vsel %vm271_vm1, %v636_v24, %v637_v25  ;;  %v858_v24 = vld [vmem:[%s1967_s4 + $0x48] sm:$0xff] }
 0x103   :  { %v648_v44 = vadd.f32 %v638_v13, %v582_v34  ;;  %919 = vmatpush.msrb.mxu1 %v875_v23  ;;  %891 = vmatpush.msrb.mxu0 %v858_v24  ;;  %v873_v34 = vld [vmem:[%s1968_s5 + $0x40] sm:$0xff]  ;;  %v854_v13 = vld [vmem:[%s1967_s4 + $0x28] sm:$0xff] }
 0x105   :  { %v654_v52 = vadd.f32 %v1667_v39, %v648_v44  ;;  %892 = vmatpush.msrb.mxu0 %v857_v26  ;;  %v868_v44 = vld [vmem:[%s1968_s5 + $0x18] sm:$0xff] }
 0x107   :  { %v626_v57 = vpop.f32.mrf.mxu0  ;;  %v658_v46 = vmax.f32 %v654_v52, 0.0  ;;  %893 = vmatpush.msrb.mxu0 %v856_v35 }
 0x108   :  { %v639_v30 = vrot.slane %v626_v57, 1 }
 0x109   :  { %694 = vmatmul.f32.vlgmr.msra.gmra.mxu1 %v658_v46  ;;  %756 = vmatmul.f32.vlgmr.msra.gmra.mxu2 %v658_v46 }
 0x10a   :  { %v640_v2 = vsel %vm271_vm1, %v637_v25, %v639_v30  ;;  %806 = vmatmul.f32.vlgmr.msra.gmra.mxu3 %v658_v46  ;;  %v874_v25 = vld [vmem:[%s1968_s5 + $0x48] sm:$0xff]  ;;  %894 = vmatpush.msrb.mxu0 %v855_v38  ;;  %v1348_v38 = vld [vmem:[%s1971_s8 + $0xb0] sm:$0xff] }
 0x10b   :  { %v649_v5 = vadd.f32 %v640_v2, %v583_v29  ;;  %920 = vmatpush.msrb.mxu1 %v874_v25 }
 0x10c   :  { %895 = vmatpush.msrb.mxu0 %v854_v13  ;;  %v1346_v13 = vld [vmem:[%s1971_s8 + $0xa0] sm:$0xff] }
 0x10d   :  { %v655_v8 = vadd.f32 %v1667_v39, %v649_v5  ;;  %921 = vmatpush.msrb.mxu1 %v873_v34 }
 0x10e   :  { %896 = vmatpush.msrb.mxu0 %v853_v61 }
 0x10f   :  { %v629_v10 = vpop.f32.mrf.mxu0  ;;  %v659_v33 = vmax.f32 %v655_v8, 0.0  ;;  %922 = vmatpush.msrb.mxu1 %v872_v36  ;;  %v1349_v36 = vld [vmem:[%s1971_s8 + $0xb8] sm:$0xff] }
 0x110   :  { %v641_v60 = vrot.slane %v629_v10, 1  ;;  %897 = vmatpush.msrb.mxu0 %v852_v43  ;;  %v1344_v43 = vld [vmem:[%s1971_s8 + $0x90] sm:$0xff] }
 0x111   :  { %697 = vmatmul.f32.gmra.mxu1 %v659_v33  ;;  %759 = vmatmul.f32.gmra.mxu2 %v659_v33 }
 0x112   :  { %v642_v50 = vsel %vm271_vm1, %v639_v30, %v641_v60  ;;  %809 = vmatmul.f32.gmra.mxu3 %v659_v33  ;;  %v647_v15 = vsel %vm271_vm1, %v641_v60, 0.0  ;;  %923 = vmatpush.msrb.mxu1 %v871_v42  ;;  %v1347_v42 = vld [vmem:[%s1971_s8 + $0xa8] sm:$0xff] }
 0x113   :  { %v650_v41 = vadd.f32 %v642_v50, %v584_v11  ;;  %v651_v16 = vadd.f32 %v647_v15, %v585_v12  ;;  %898 = vmatpush.msrb.mxu0 %v851_v45 }
 0x115   :  { %v656_v4 = vadd.f32 %v1667_v39, %v650_v41  ;;  %v657_v18 = vadd.f32 %v1667_v39, %v651_v16  ;;  %v870_v39 = vld [vmem:[%s1968_s5 + $0x28] sm:$0xff]  ;;  %899 = vmatpush.msrb.mxu0 %v850_v48 }
 0x116   :  { %924 = vmatpush.msrb.mxu1 %v870_v39 }
 0x117   :  { %v660_v17 = vmax.f32 %v656_v4, 0.0  ;;  %v661_v19 = vmax.f32 %v657_v18, 0.0  ;;  %900 = vmatpush.msrb.mxu0 %v849_v49 }
 0x118   :  { %925 = vmatpush.msrb.mxu1 %v869_v40  ;;  %v1345_v40 = vld [vmem:[%s1971_s8 + $0x98] sm:$0xff] }
 0x119   :  { %700 = vmatmul.f32.gmra.mxu1 %v660_v17  ;;  %762 = vmatmul.f32.gmra.mxu2 %v660_v17 }
 0x11a   :  { %812 = vmatmul.f32.gmra.mxu3 %v660_v17  ;;  %926 = vmatpush.msrb.mxu1 %v868_v44 }
 0x11b   :  { %1105 = vmatpush.msra.mxu0 %v1349_v36 }
 0x11c   :  { %927 = vmatpush.msrb.mxu1 %v867_v47 }
 0x11d   :  { %1106 = vmatpush.msra.mxu0 %v1348_v38 }
 0x11e   :  { %928 = vmatpush.msrb.mxu1 %v866_v28 }
 0x11f   :  { %1107 = vmatpush.msra.mxu0 %v1347_v42 }
 0x120   :  { %929 = vmatpush.msrb.mxu1 %v865_v51  ;;  %v881_v51 = vld [vmem:[%s1969_s6] sm:$0xff] }
 0x121   :  { %703 = vmatmul.f32.gmra.mxu1 %v661_v19  ;;  %765 = vmatmul.f32.gmra.mxu2 %v661_v19 }
 0x122   :  { %815 = vmatmul.f32.gmra.mxu3 %v661_v19  ;;  %1108 = vmatpush.msra.mxu0 %v1346_v13 }
 0x124   :  { %1109 = vmatpush.msra.mxu0 %v1345_v40 }
 0x126   :  { %1110 = vmatpush.msra.mxu0 %v1344_v43 }
 0x186   :  { %v695_v52 = vpop.f32.mrf.mxu1 }
 0x187   :  { %v711_v54 = vrot.slane %v695_v52, 7  ;;  %v883_v52 = vld [vmem:[%s1970_s7] sm:$0xff] }
 0x189   :  { %v722_v46 = vsel %vm158_vm0, 0.0, %v711_v54 }
 0x18c   :  { %v757_v31 = vpop.f32.mrf.mxu2 }
 0x18d   :  { %v807_v37 = vpop.f32.mrf.mxu3  ;;  %v769_v30 = vadd.f32 %v757_v31, %v722_v46  ;;  %v1015_v31 = vld [vmem:[%s1971_s8 + $0x38] sm:$0xff]  ;;  %v1012_v46 = vld [vmem:[%s1971_s8 + $0x20] sm:$0xff] }
 0x18e   :  { %v698_v53 = vpop.f32.mrf.mxu1  ;;  %v823_v58 = vrot.slane %v807_v37, 1  ;;  %v1339_v37 = vld [vmem:[%s1971_s8 + $0x78] sm:$0xff] }
 0x18f   :  { %v712_v27 = vrot.slane %v698_v53, 7  ;;  %v1014_v53 = vld [vmem:[%s1971_s8 + $0x30] sm:$0xff] }
 0x191   :  { %v713_v6 = vsel %vm158_vm0, %v711_v54, %v712_v27  ;;  %v1338_v54 = vld [vmem:[%s1971_s8 + $0x70] sm:$0xff] }
 0x194   :  { %v760_v55 = vpop.f32.mrf.mxu2 }
 0x195   :  { %v810_v57 = vpop.f32.mrf.mxu3  ;;  %v770_v8 = vadd.f32 %v760_v55, %v713_v6  ;;  %v1013_v55 = vld [vmem:[%s1971_s8 + $0x28] sm:$0xff]  ;;  %v1332_v6 = vld [vmem:[%s1971_s8 + $0x40] sm:$0xff] }
 0x196   :  { %v824_v59 = vrot.slane %v810_v57, 1  ;;  %v701_v62 = vpop.f32.mrf.mxu1  ;;  %v1337_v57 = vld [vmem:[%s1971_s8 + $0x68] sm:$0xff] }
 0x197   :  { %v714_v33 = vrot.slane %v701_v62, 7  ;;  %v1011_v62 = vld [vmem:[%s1971_s8 + $0x18] sm:$0xff] }
 0x198   :  { %v825_v29 = vsel %vm271_vm1, %v823_v58, %v824_v59  ;;  %v1336_v58 = vld [vmem:[%s1971_s8 + $0x60] sm:$0xff] }
 0x199   :  { %v835_v56 = vadd.f32 %v825_v29, %v769_v30  ;;  %v715_v50 = vsel %vm158_vm0, %v712_v27, %v714_v33  ;;  %v884_v30 = vld [vmem:[%s1970_s7 + $0x8] sm:$0xff]  ;;  %v1335_v29 = vld [vmem:[%s1971_s8 + $0x58] sm:$0xff] }
 0x19a   :  { %v1009_v27 = vld [vmem:[%s1971_s8 + $0x8] sm:$0xff] }
 0x19b   :  { %v841_v0 = vadd.f32 %v840_v63, %v835_v56  ;;  %v1334_v56 = vld [vmem:[%s1971_s8 + $0x50] sm:$0xff] }
 0x19c   :  { %v763_v2 = vpop.f32.mrf.mxu2 }
 0x19d   :  { %v813_v3 = vpop.f32.mrf.mxu3  ;;  %v845_v5 = vmax.f32 %v841_v0, 0.0  ;;  %v771_v12 = vadd.f32 %v763_v2, %v715_v50  ;;  %v1343_v0 = vld [vmem:[%s1971_s8 + $0x88] sm:$0xff] }
 0x19e   :  { %v826_v7 = vrot.slane %v813_v3, 1  ;;  %v704_v9 = vpop.f32.mrf.mxu1  ;;  %v1333_v2 = vld [vmem:[%s1971_s8 + $0x48] sm:$0xff]  ;;  %1111 = vmatpush.msra.mxu0 %v1343_v0  ;;  %v1008_v3 = vld [vmem:[%s1971_s8] sm:$0xff] }
 0x19f   :  { %901 = vmatmul.f32.vlgmr.msrb.gmra.mxu0 %v845_v5  ;;  %930 = vmatmul.f32.vlgmr.msrb.gmra.mxu1 %v845_v5  ;;  %v716_v11 = vrot.slane %v704_v9, 7  ;;  %v1342_v5 = vld [vmem:[%s1971_s8 + $0x80] sm:$0xff]  ;;  %v1149_v50 = vld [vmem:[%s1973_s10 + $0x28] sm:$0xff] }
 0x1a0   :  { %v827_v1 = vsel %vm271_vm1, %v824_v59, %v826_v7  ;;  %v882_v59 = vld [vmem:[%s1969_s6 + $0x8] sm:$0xff]  ;;  %1112 = vmatpush.msra.mxu0 %v1342_v5  ;;  %s1352_s6 = sld [smem:[#allocation2 + $0x2]] }
 0x1a1   :  { %v836_v10 = vadd.f32 %v827_v1, %v770_v8  ;;  %v717_v4 = vsel %vm158_vm0, %v714_v33, %v716_v11  ;;  %v1143_v11 = vld [vmem:[%s1972_s9 + $0x38] sm:$0xff] }
 0x1a2   :  { %1168 = vmatpush.msra.mxu1 %v1143_v11 }
 0x1a3   :  { %v842_v60 = vadd.f32 %v840_v63, %v836_v10 }
 0x1a4   :  { %v766_v41 = vpop.f32.mrf.mxu2 }
 0x1a5   :  { %v816_v32 = vpop.f32.mrf.mxu3  ;;  %v846_v14 = vmax.f32 %v842_v60, 0.0  ;;  %v772_v17 = vadd.f32 %v766_v41, %v717_v4  ;;  %v1151_v60 = vld [vmem:[%s1973_s10 + $0x38] sm:$0xff]  ;;  %v1141_v41 = vld [vmem:[%s1972_s9 + $0x28] sm:$0xff] }
 0x1a6   :  { %v828_v15 = vrot.slane %v816_v32, 1  ;;  %v1150_v32 = vld [vmem:[%s1973_s10 + $0x30] sm:$0xff]  ;;  %v1147_v4 = vld [vmem:[%s1973_s10 + $0x18] sm:$0xff] }
 0x1a7   :  { %904 = vmatmul.f32.gmra.mxu0 %v846_v14  ;;  %933 = vmatmul.f32.gmra.mxu1 %v846_v14  ;;  %v1142_v14 = vld [vmem:[%s1972_s9 + $0x30] sm:$0xff] }
 0x1a8   :  { %v829_v16 = vsel %vm271_vm1, %v826_v7, %v828_v15  ;;  %v834_v19 = vsel %vm271_vm1, %v828_v15, 0.0  ;;  %1169 = vmatpush.msra.mxu1 %v1142_v14  ;;  %v1148_v15 = vld [vmem:[%s1973_s10 + $0x20] sm:$0xff] }
 0x1a9   :  { %v837_v18 = vadd.f32 %v829_v16, %v771_v12  ;;  %v838_v21 = vadd.f32 %v834_v19, %v772_v17  ;;  %v1140_v12 = vld [vmem:[%s1972_s9 + $0x20] sm:$0xff]  ;;  %v1139_v16 = vld [vmem:[%s1972_s9 + $0x18] sm:$0xff]  ;;  %v1146_v17 = vld [vmem:[%s1973_s10 + $0x10] sm:$0xff] }
 0x1aa   :  { %1170 = vmatpush.msra.mxu1 %v1141_v41  ;;  %v1145_v19 = vld [vmem:[%s1973_s10 + $0x8] sm:$0xff] }
 0x1ab   :  { %v843_v20 = vadd.f32 %v840_v63, %v837_v18  ;;  %v844_v23 = vadd.f32 %v840_v63, %v838_v21  ;;  %v1010_v63 = vld [vmem:[%s1971_s8 + $0x10] sm:$0xff]  ;;  %v1144_v21 = vld [vmem:[%s1973_s10] sm:$0xff] }
 0x1ac   :  { %1171 = vmatpush.msra.mxu1 %v1140_v12  ;;  %v1138_v18 = vld [vmem:[%s1972_s9 + $0x10] sm:$0xff] }
 0x1ad   :  { %v847_v22 = vmax.f32 %v843_v20, 0.0  ;;  %v848_v24 = vmax.f32 %v844_v23, 0.0  ;;  %v1137_v20 = vld [vmem:[%s1972_s9 + $0x8] sm:$0xff] }
 0x1ae   :  { %1172 = vmatpush.msra.mxu1 %v1139_v16 }
 0x1af   :  { %907 = vmatmul.f32.gmra.mxu0 %v847_v22  ;;  %936 = vmatmul.f32.gmra.mxu1 %v847_v22  ;;  %v1136_v22 = vld [vmem:[%s1972_s9] sm:$0xff] }
 0x1b0   :  { %1173 = vmatpush.msra.mxu1 %v1138_v18 }
 0x1b2   :  { %1174 = vmatpush.msra.mxu1 %v1137_v20 }
 0x1b4   :  { %1175 = vmatpush.msra.mxu1 %v1136_v22 }
 0x1b7   :  { %910 = vmatmul.f32.gmra.mxu0 %v848_v24  ;;  %939 = vmatmul.f32.gmra.mxu1 %v848_v24 }
 0x21c   :  { %v902_v25 = vpop.f32.mrf.mxu0  ;;  %v931_v26 = vpop.f32.mrf.mxu1 }
 0x21d   :  { %v943_v49 = vmax.f32 %v902_v25, %v931_v26 }
 0x224   :  { %v905_v34 = vpop.f32.mrf.mxu0  ;;  %v934_v35 = vpop.f32.mrf.mxu1 }
 0x225   :  { %v944_v28 = vmax.f32 %v905_v34, %v934_v35 }
 0x22c   :  { %v908_v39 = vpop.f32.mrf.mxu0  ;;  %v937_v61 = vpop.f32.mrf.mxu1 }
 0x22d   :  { %v945_v48 = vmax.f32 %v908_v39, %v937_v61  ;;  %v1131_v39 = vstv %s1352_s6 }
 0x234   :  { %v911_v44 = vpop.f32.mrf.mxu0  ;;  %v940_v45 = vpop.f32.mrf.mxu1 }
 0x235   :  { %v946_v47 = vmax.f32 %v911_v44, %v940_v45 }
 0x237   :  { %966 = vmatpush.msrb.mxu2 %v946_v47  ;;  %995 = vmatpush.msrb.mxu3 %v946_v47 }
 0x239   :  { %967 = vmatpush.msrb.mxu2 %v945_v48  ;;  %996 = vmatpush.msrb.mxu3 %v945_v48 }
 0x23b   :  { %968 = vmatpush.msrb.mxu2 %v944_v28  ;;  %997 = vmatpush.msrb.mxu3 %v944_v28 }
 0x23d   :  { %969 = vmatpush.msrb.mxu2 %v943_v49  ;;  %998 = vmatpush.msrb.mxu3 %v943_v49 }
 0x23e   :  { %1326 = vmatmul.msk.f32.vlgmr.msrb.gmra.mxu2 %vm947_vm2, %v881_v51  ;;  %1328 = vmatmul.msk.f32.vlgmr.msrb.gmra.mxu3 %vm947_vm2, %v883_v52 }
 0x23f   :  { %1031 = vmatpush.msra.mxu2 %v1015_v31  ;;  %1071 = vmatpush.msra.mxu3 %v1339_v37 }
 0x241   :  { %1032 = vmatpush.msra.mxu2 %v1014_v53  ;;  %1072 = vmatpush.msra.mxu3 %v1338_v54 }
 0x243   :  { %1033 = vmatpush.msra.mxu2 %v1013_v55  ;;  %1073 = vmatpush.msra.mxu3 %v1337_v57 }
 0x245   :  { %1034 = vmatpush.msra.mxu2 %v1012_v46  ;;  %1074 = vmatpush.msra.mxu3 %v1336_v58  ;;  %v1152_v58 = vld [vmem:[%s1974_s11] sm:$0xff] }
 0x246   :  { %1327 = vmatmul.msk.f32.gmra.mxu2 %vm947_vm2, %v882_v59  ;;  %1329 = vmatmul.msk.f32.gmra.mxu3 %vm947_vm2, %v884_v30  ;;  %v1153_v59 = vld [vmem:[%s1975_s12] sm:$0xff]  ;;  %v1260_v30 = vld [vmem:[%s1977_s14 + $0x18] sm:$0xff] }
 0x247   :  { %1035 = vmatpush.msra.mxu2 %v1011_v62  ;;  %1075 = vmatpush.msra.mxu3 %v1335_v29  ;;  %v1259_v62 = vld [vmem:[%s1977_s14 + $0x10] sm:$0xff]  ;;  %v1258_v29 = vld [vmem:[%s1977_s14 + $0x8] sm:$0xff] }
 0x248   :  { %1300 = vmatpush.msrb.mxu1 %v1260_v30 }
 0x249   :  { %1036 = vmatpush.msra.mxu2 %v1010_v63  ;;  %1076 = vmatpush.msra.mxu3 %v1334_v56  ;;  %v1257_v63 = vld [vmem:[%s1977_s14] sm:$0xff] }
 0x24a   :  { %1301 = vmatpush.msrb.mxu1 %v1259_v62 }
 0x24b   :  { %1037 = vmatpush.msra.mxu2 %v1009_v27  ;;  %1077 = vmatpush.msra.mxu3 %v1333_v2  ;;  %v1256_v2 = vld [vmem:[%s1976_s13] sm:$0x7f] }
 0x24c   :  { %1302 = vmatpush.msrb.mxu1 %v1258_v29 }
 0x24d   :  { %1038 = vmatpush.msra.mxu2 %v1008_v3  ;;  %1078 = vmatpush.msra.mxu3 %v1332_v6 }
 0x24e   :  { %1303 = vmatpush.msrb.mxu1 %v1257_v63 }
 0x24f   :  { %1191 = vmatpush.msrb.mxu2 %v1151_v60 }
 0x251   :  { %1192 = vmatpush.msrb.mxu2 %v1150_v32 }
 0x253   :  { %1193 = vmatpush.msrb.mxu2 %v1149_v50 }
 0x255   :  { %1194 = vmatpush.msrb.mxu2 %v1148_v15 }
 0x257   :  { %1195 = vmatpush.msrb.mxu2 %v1147_v4 }
 0x259   :  { %1196 = vmatpush.msrb.mxu2 %v1146_v17 }
 0x25b   :  { %1197 = vmatpush.msrb.mxu2 %v1145_v19 }
 0x25d   :  { %1198 = vmatpush.msrb.mxu2 %v1144_v21 }
 0x2c1   :  { %v971_v7 = vpop.f32.mrf.mxu2  ;;  %v1000_v8 = vpop.f32.mrf.mxu3 }
 0x2c2   :  { %v1006_v1 = vmax.f32 %v971_v7, %v1000_v8 }
 0x2c4   :  { %1330 = vmatmul.msk.f32.vlgmr.msra.gmra.mxu2 %vm1016_vm3, %v1006_v1  ;;  %1350 = vmatmul.msk.f32.vlgmr.msra.gmra.mxu0 %vm1016_vm3, %v1006_v1 }
 0x2c5   :  { %1340 = vmatmul.msk.f32.vlgmr.msra.gmra.mxu3 %vm1016_vm3, %v1006_v1 }
 0x2c9   :  { %v974_v9 = vpop.f32.mrf.mxu2  ;;  %v1003_v10 = vpop.f32.mrf.mxu3 }
 0x2ca   :  { %v1007_v33 = vmax.f32 %v974_v9, %v1003_v10 }
 0x2cc   :  { %1331 = vmatmul.msk.f32.gmra.mxu2 %vm1016_vm3, %v1007_v33  ;;  %1351 = vmatmul.msk.f32.gmra.mxu0 %vm1016_vm3, %v1007_v33 }
 0x2cd   :  { %1341 = vmatmul.msk.f32.gmra.mxu3 %vm1016_vm3, %v1007_v33 }
 0x341   :  { %v1114_v23 = vpop.f32.mrf.mxu0 }
 0x342   :  { %v1122_v35 = vrot.slane %v1114_v23, 1 }
 0x347   :  { %v1040_v24 = vpop.f32.mrf.mxu2 }
 0x348   :  { %v1048_v25 = vrot.slane %v1040_v24, 7  ;;  %v1080_v26 = vpop.f32.mrf.mxu3 }
 0x349   :  { %v1117_v34 = vpop.f32.mrf.mxu0 }
 0x34a   :  { %v1123_v36 = vrot.slane %v1117_v34, 1  ;;  %v1053_v38 = vsel %vm158_vm0, 0.0, %v1048_v25 }
 0x34b   :  { %v1086_v42 = vadd.f32 %v1080_v26, %v1053_v38 }
 0x34c   :  { %v1124_v13 = vsel %vm271_vm1, %v1122_v35, %v1123_v36  ;;  %v1127_v49 = vsel %vm271_vm1, %v1123_v36, 0.0 }
 0x34d   :  { %v1128_v61 = vadd.f32 %v1124_v13, %v1086_v42 }
 0x34f   :  { %v1132_v40 = vadd.f32 %v1131_v39, %v1128_v61  ;;  %v1043_v43 = vpop.f32.mrf.mxu2 }
 0x350   :  { %v1049_v44 = vrot.slane %v1043_v43, 7  ;;  %v1083_v48 = vpop.f32.mrf.mxu3 }
 0x351   :  { %v1134_v45 = vmax.f32 %v1132_v40, 0.0 }
 0x352   :  { %v1050_v47 = vsel %vm158_vm0, %v1048_v25, %v1049_v44 }
 0x353   :  { %v1087_v28 = vadd.f32 %v1083_v48, %v1050_v47  ;;  %1355 = vmatmul.msk.f32.vlgmr.msrb.gmra.mxu2 %vm1016_vm3, %v1134_v45  ;;  %1353 = vmatmul.msk.f32.vlgmr.msra.gmra.mxu1 %vm1016_vm3, %v1134_v45 }
 0x355   :  { %v1129_v51 = vadd.f32 %v1127_v49, %v1087_v28 }
 0x357   :  { %v1133_v52 = vadd.f32 %v1131_v39, %v1129_v51 }
 0x359   :  { %v1135_v31 = vmax.f32 %v1133_v52, 0.0 }
 0x35b   :  { %1356 = vmatmul.msk.f32.gmra.mxu2 %vm1016_vm3, %v1135_v31  ;;  %1354 = vmatmul.msk.f32.gmra.mxu1 %vm1016_vm3, %v1135_v31 }
 0x3d0   :  { %v1177_v37 = vpop.f32.mrf.mxu1 }
 0x3d6   :  { %v1200_v53 = vpop.f32.mrf.mxu2 }
 0x3d7   :  { %v1206_v46 = vmax.f32 %v1177_v37, %v1200_v53 }
 0x3d8   :  { %v1180_v54 = vpop.f32.mrf.mxu1 }
 0x3de   :  { %v1203_v55 = vpop.f32.mrf.mxu2 }
 0x3df   :  { %v1207_v57 = vmax.f32 %v1180_v54, %v1203_v55 }
 0x3e1   :  { %1226 = vmatpush.msrb.mxu3 %v1207_v57 }
 0x3e3   :  { %1227 = vmatpush.msrb.mxu3 %v1206_v46 }
 0x3e4   :  { %1357 = vmatmul.msk.f32.vlgmr.msrb.gmra.mxu3 %vm1208_vm4, %v1152_v58 }
 0x3e5   :  { %1249 = vmatpush.msra.mxu3 %v1207_v57 }
 0x3e7   :  { %1250 = vmatpush.msra.mxu3 %v1206_v46 }
 0x3ec   :  { %1358 = vmatmul.msk.f32.vlgmr.msra.gmra.mxu3 %vm1208_vm4, %v1153_v59 }
 0x467   :  { %v1229_v56 = vpop.f32.mrf.mxu3 }
 0x46f   :  { %v1252_v27 = vpop.f32.mrf.mxu3 }
 0x470   :  { %v1255_v0 = vmax.f32 %v1229_v56, %v1252_v27 }
 0x472   :  { %1280 = vmatpush.msrb.mxu0 %v1255_v0 }
 0x473   :  { %1359 = vmatmul.msk.f32.vlgmr.msrb.gmra.mxu0 %vm1261_vm5, %v1256_v2 }
 0x4f0   :  { %v1282_v3 = vpop.f32.mrf.mxu0 }
 0x4f1   :  { %1360 = vmatmul.msk.f32.vlgmr.msrb.gmra.mxu1 %vm947_vm2, %v1282_v3 }
 0x56e   :  { %v1305_v5 = vpop.f32.mrf.mxu1 }
 0x56f   :  { %1309 = vst.msk [vmem:[%s1978_s15] sm:$0x7f] %vm1308_vm6, %v1305_v5 }
 0x570   :  { %1314 = vsyncpa [#allocation3], 1 }
 0x571   :  { %1315 = vsyncpa [#allocation7], 1 }
 0x572   :  { %1316 = vsyncpa [#allocation4], 1 }

</bundles_post_ra>
